<compile_context>
chip_gen: v6e
topology: v6e:2x2x1
jax: 0.10.0
libtpu: 0.0.40
codegen_flags: <defaults>
</compile_context>

<pallas_src>
import functools

import jax
import jax.numpy as jnp
from jax.experimental import pallas as pl
from jax.experimental.pallas import tpu as pltpu


# ---------------------------------------------------------------------------
# Conv kernel: one padded (optionally space-to-depth'd) image per grid step.
# ---------------------------------------------------------------------------
def _conv_shift_kernel(x_ref, w_ref, b_ref, o_ref, *, r, hout, wout, act):
    """Shifted-GEMM convolution for one image.

    x_ref: (Hq, Wq, C)       bf16, Hq = hout + r - 1, Wq = wout + r - 1
    w_ref: (r*r, C, Cout)    bf16, shift-major weights
    b_ref: (1, Cout)         f32
    o_ref: (hout, wout, Cout)
    """
    c = x_ref.shape[-1]
    cout = o_ref.shape[-1]
    # Bias folded into the accumulator init (hoisted out of the row loop).
    bias = jnp.broadcast_to(b_ref[...].astype(jnp.float32), (wout, cout))

    def row_body(ho, carry):
        acc = bias
        for a in range(r):
            # Aligned dynamic load of one padded input row: (Wq, C).
            row = x_ref[pl.ds(ho + a, 1), :, :][0]
            for b in range(r):
                # Static (unaligned) window shift along W, done on the value.
                win = jax.lax.slice(row, (b, 0), (b + wout, c))      # (wout, C)
                acc = acc + jnp.dot(
                    win, w_ref[a * r + b], preferred_element_type=jnp.float32
                )
        if act == "lrelu":
            acc = jnp.where(acc > 0, acc, 0.2 * acc)                 # LeakyReLU(0.2)
        elif act == "sigmoid":
            acc = 1.0 / (1.0 + jnp.exp(-acc))                        # exact sigmoid
        o_ref[pl.ds(ho, 1), :, :] = acc.reshape(1, wout, cout).astype(o_ref.dtype)
        return carry

    jax.lax.fori_loop(0, hout, row_body, 0)


# ---------------------------------------------------------------------------
# JAX-side layout prep (one fused elementwise/relayout pass per layer).
# ---------------------------------------------------------------------------
def _space_to_depth(xp):
    n, hp, wp, c = xp.shape
    xs = xp.reshape(n, hp // 2, 2, wp // 2, 2, c)
    xs = xs.transpose(0, 1, 3, 2, 4, 5)          # (n, h2, w2, dh, dw, c)
    return xs.reshape(n, hp // 2, wp // 2, 4 * c)


def _weights_stride2(w):
    # (Cout, Cin, 4, 4) -> (4 shifts (a,b), K=(dh,dw,Cin), Cout)
    cout, cin = w.shape[0], w.shape[1]
    wt = jnp.transpose(w, (2, 3, 1, 0))          # (kh, kw, cin, cout)
    wt = wt.reshape(2, 2, 2, 2, cin, cout)       # (a, dh, b, dw, cin, cout)
    wt = wt.transpose(0, 2, 1, 3, 4, 5)          # (a, b, dh, dw, cin, cout)
    return wt.reshape(4, 4 * cin, cout)


def _weights_stride1(w):
    # (Cout, Cin, 4, 4) -> (16 shifts (kh,kw), Cin, Cout)
    cout, cin = w.shape[0], w.shape[1]
    wt = jnp.transpose(w, (2, 3, 1, 0))          # (kh, kw, cin, cout)
    return wt.reshape(16, cin, cout)


# ---------------------------------------------------------------------------
# Conv2d(4x4, stride, padding=1) on an NHWC activation via the Pallas kernel.
# ---------------------------------------------------------------------------
def conv2d_pallas(x, w, b, *, stride, act=None, out_dtype=jnp.bfloat16):
    n, h, wd, _ = x.shape
    cout = w.shape[0]

    if stride == 2:
        assert h % 2 == 0 and wd % 2 == 0, "stride-2 stage needs even H, W"
        hout, wout, r = h // 2, wd // 2, 2
        xq = _space_to_depth(jnp.pad(x, ((0, 0), (1, 1), (1, 1), (0, 0))))
        wq = _weights_stride2(w)
    else:
        hout, wout, r = h - 1, wd - 1, 4
        xq = jnp.pad(x, ((0, 0), (1, 1), (1, 1), (0, 0)))
        wq = _weights_stride1(w)

    xq = xq.astype(jnp.bfloat16)
    wq = wq.astype(jnp.bfloat16)
    bq = b.reshape(1, cout).astype(jnp.float32)
    _, hq, wqd, c = xq.shape

    kernel = functools.partial(
        _conv_shift_kernel, r=r, hout=hout, wout=wout, act=act
    )
    flops = 2 * n * hout * wout * (r * r * c) * cout
    bytes_accessed = (
        xq.size * 2 + wq.size * 2 + bq.size * 4
        + n * hout * wout * cout * jnp.dtype(out_dtype).itemsize
    )

    return pl.pallas_call(
        kernel,
        out_shape=jax.ShapeDtypeStruct((n, hout, wout, cout), out_dtype),
        grid_spec=pltpu.PrefetchScalarGridSpec(
            num_scalar_prefetch=0,
            grid=(n,),
            in_specs=[
                pl.BlockSpec((None, hq, wqd, c), lambda i: (i, 0, 0, 0)),
                pl.BlockSpec((r * r, c, cout), lambda i: (0, 0, 0)),
                pl.BlockSpec((1, cout), lambda i: (0, 0)),
            ],
            out_specs=pl.BlockSpec((None, hout, wout, cout), lambda i: (i, 0, 0, 0)),
        ),
        compiler_params=pltpu.CompilerParams(
            dimension_semantics=("parallel",),
        ),
        cost_estimate=pl.CostEstimate(
            flops=flops,
            transcendentals=n * hout * wout * cout if act == "sigmoid" else 0,
            bytes_accessed=bytes_accessed,
        ),
    )(xq, wq, bq)


# ---------------------------------------------------------------------------
# BatchNorm2d (train mode, batch stats, biased var) + LeakyReLU(0.2), NHWC.
# Single-pass f32 stats; affine+lrelu fuse with the next layer's pad/s2d pass.
# ---------------------------------------------------------------------------
def batchnorm_lrelu_nhwc(x, gamma, beta, eps=1e-5):
    xf = x.astype(jnp.float32)
    cnt = x.shape[0] * x.shape[1] * x.shape[2]
    s1 = jnp.sum(xf, axis=(0, 1, 2))
    s2 = jnp.sum(xf * xf, axis=(0, 1, 2))
    mean = s1 / cnt
    var = jnp.maximum(s2 / cnt - mean * mean, 0.0)
    scale = gamma * jax.lax.rsqrt(var + eps)
    shift = beta - mean * scale
    y = xf * scale + shift
    y = jnp.where(y > 0, y, 0.2 * y)
    return y.astype(jnp.bfloat16)


# ---------------------------------------------------------------------------
# Module D: parameters + forward
# ---------------------------------------------------------------------------
def init_params(key, n_channel_input, n_channel_output, n_filters):
    cin0 = n_channel_input + n_channel_output
    shapes = [
        (n_filters, cin0, 4, 4),
        (n_filters * 2, n_filters, 4, 4),
        (n_filters * 4, n_filters * 2, 4, 4),
        (n_filters * 8, n_filters * 4, 4, 4),
        (1, n_filters * 8, 4, 4),
    ]
    params = {}
    keys = jax.random.split(key, len(shapes))
    for idx, (k, shp) in enumerate(zip(keys, shapes), start=1):
        fan_in = shp[1] * shp[2] * shp[3]
        params[f"w{idx}"] = (
            jax.random.normal(k, shp, dtype=jnp.float32) * (1.0 / jnp.sqrt(fan_in))
        )
        params[f"b{idx}"] = jnp.zeros((shp[0],), dtype=jnp.float32)
    # BatchNorm affine params (PyTorch default: weight=1, bias=0)
    params["bn2_g"] = jnp.ones((n_filters * 2,), jnp.float32)
    params["bn2_b"] = jnp.zeros((n_filters * 2,), jnp.float32)
    params["bn4_g"] = jnp.ones((n_filters * 4,), jnp.float32)
    params["bn4_b"] = jnp.zeros((n_filters * 4,), jnp.float32)
    params["bn8_g"] = jnp.ones((n_filters * 8,), jnp.float32)
    params["bn8_b"] = jnp.zeros((n_filters * 8,), jnp.float32)
    return params


def d_forward(params, x_nchw):
    x = jnp.transpose(x_nchw, (0, 2, 3, 1)).astype(jnp.bfloat16)      # -> NHWC
    # encoder1 = conv1(x); its only consumer is lrelu -> conv2, so fuse lrelu.
    a1 = conv2d_pallas(x, params["w1"], params["b1"], stride=2, act="lrelu")
    # encoder2 = BN2(conv2(lrelu(e1)))
    c2 = conv2d_pallas(a1, params["w2"], params["b2"], stride=2)
    a2 = batchnorm_lrelu_nhwc(c2, params["bn2_g"], params["bn2_b"])
    # encoder3 = BN4(conv3(lrelu(e2)))
    c3 = conv2d_pallas(a2, params["w3"], params["b3"], stride=2)
    a3 = batchnorm_lrelu_nhwc(c3, params["bn4_g"], params["bn4_b"])
    # encoder4 = BN8(conv4(lrelu(e3)))
    c4 = conv2d_pallas(a3, params["w4"], params["b4"], stride=1)
    a4 = batchnorm_lrelu_nhwc(c4, params["bn8_g"], params["bn8_b"])
    # output = sigmoid(conv5(lrelu(e4)))   (exact sigmoid fused in the kernel)
    out = conv2d_pallas(a4, params["w5"], params["b5"], stride=1,
                        act="sigmoid", out_dtype=jnp.float32)
    return jnp.transpose(out, (0, 3, 1, 2))                           # -> NCHW


if __name__ == "__main__":
    n_channel_input = 3
    n_channel_output = 3
    n_filters = 8
    N, H, W = 2, 32, 32

    key = jax.random.PRNGKey(0)
    kx, kp = jax.random.split(key)
    x = jax.random.normal(
        kx, (N, n_channel_input + n_channel_output, H, W), dtype=jnp.float32
    )
    params = init_params(kp, n_channel_input, n_channel_output, n_filters)

    out = jax.jit(d_forward)(params, x)
    out = jax.block_until_ready(out)
    assert out.shape == (N, 1, 2, 2), out.shape
    assert bool(jnp.all(jnp.isfinite(out)))
    assert bool(jnp.all((out >= 0) & (out <= 1)))
    print("KERNEL_OK")
</pallas_src>

<mosaic_0001>
module attributes {stable_mosaic.version = 11 : i64} {
  func.func @_conv_shift_kernel(%arg0: i32, %arg1: memref<1x17x17x24xbf16, #tpu.memory_space<vmem>>, %arg2: memref<4x24x8xbf16, #tpu.memory_space<vmem>>, %arg3: memref<1x8xf32, #tpu.memory_space<vmem>>, %arg4: memref<1x16x16x8xbf16, #tpu.memory_space<vmem>>) attributes {dimension_semantics = [#tpu.dimension_semantics<parallel>], iteration_bounds = array<i64: 2>, scalar_prefetch = 0 : i64, scratch_operands = 0 : i64, tpu.core_type = #tpu.core_type<tc>, window_params = [{transform_indices = @transform_0, window_bounds = array<i64: 1, 17, 17, 24>}, {pipeline_mode = #tpu.pipeline_mode<synchronous>, transform_indices = @transform_1, window_bounds = array<i64: 4, 24, 8>}, {pipeline_mode = #tpu.pipeline_mode<synchronous>, transform_indices = @transform_2, window_bounds = array<i64: 1, 8>}, {transform_indices = @transform_3, window_bounds = array<i64: 1, 16, 16, 8>}]} {
    %c0 = arith.constant 0 : index
    %c0_0 = arith.constant 0 : index
    %0 = vector.load %arg3[%c0, %c0_0] : memref<1x8xf32, #tpu.memory_space<vmem>>, vector<1x8xf32>
    %1 = vector.shape_cast %0 : vector<1x8xf32> to vector<1x8xf32>
    %2 = vector.broadcast %1 : vector<1x8xf32> to vector<16x8xf32>
    %c0_i32 = arith.constant 0 : i32
    %c16_i32 = arith.constant 16 : i32
    %3 = arith.addi %c0_i32, %c16_i32 : i32
    %c1_i32 = arith.constant 1 : i32
    scf.for %arg5 = %c0_i32 to %3 step %c1_i32  : i32 {
      %c0_i32_2 = arith.constant 0 : i32
      %4 = arith.addi %arg5, %c0_i32_2 : i32
      %c0_3 = arith.constant 0 : index
      %5 = arith.index_cast %4 : i32 to index
      %c0_4 = arith.constant 0 : index
      %c0_5 = arith.constant 0 : index
      %6 = vector.load %arg1[%c0_3, %5, %c0_4, %c0_5] : memref<1x17x17x24xbf16, #tpu.memory_space<vmem>>, vector<1x1x17x24xbf16>
      %7 = vector.shape_cast %6 : vector<1x1x17x24xbf16> to vector<1x17x24xbf16>
      %8 = vector.shape_cast %7 : vector<1x17x24xbf16> to vector<17x24xbf16>
      %9 = vector.extract_strided_slice %8 {offsets = [0, 0], sizes = [16, 24], strides = [1, 1]} : vector<17x24xbf16> to vector<16x24xbf16>
      %c0_6 = arith.constant 0 : index
      %c0_7 = arith.constant 0 : index
      %c0_8 = arith.constant 0 : index
      %10 = vector.load %arg2[%c0_6, %c0_7, %c0_8] : memref<4x24x8xbf16, #tpu.memory_space<vmem>>, vector<1x24x8xbf16>
      %11 = vector.shape_cast %10 : vector<1x24x8xbf16> to vector<24x8xbf16>
      %cst = arith.constant dense<0.000000e+00> : vector<16x8xf32>
      %12 = tpu.matmul %9, %11, %cst {dimension_numbers = #tpu.dot_dimension_numbers<[1], [0], [0], [1], [0, 0, 1, 1], [], []>} : vector<16x24xbf16>, vector<24x8xbf16>, vector<16x8xf32> -> vector<16x8xf32>
      %13 = arith.addf %2, %12 : vector<16x8xf32>
      %14 = vector.extract_strided_slice %8 {offsets = [1, 0], sizes = [16, 24], strides = [1, 1]} : vector<17x24xbf16> to vector<16x24xbf16>
      %c1 = arith.constant 1 : index
      %c0_9 = arith.constant 0 : index
      %c0_10 = arith.constant 0 : index
      %15 = vector.load %arg2[%c1, %c0_9, %c0_10] : memref<4x24x8xbf16, #tpu.memory_space<vmem>>, vector<1x24x8xbf16>
      %16 = vector.shape_cast %15 : vector<1x24x8xbf16> to vector<24x8xbf16>
      %cst_11 = arith.constant dense<0.000000e+00> : vector<16x8xf32>
      %17 = tpu.matmul %14, %16, %cst_11 {dimension_numbers = #tpu.dot_dimension_numbers<[1], [0], [0], [1], [0, 0, 1, 1], [], []>} : vector<16x24xbf16>, vector<24x8xbf16>, vector<16x8xf32> -> vector<16x8xf32>
      %18 = arith.addf %13, %17 : vector<16x8xf32>
      %c1_i32_12 = arith.constant 1 : i32
      %19 = arith.addi %arg5, %c1_i32_12 : i32
      %c0_13 = arith.constant 0 : index
      %20 = arith.index_cast %19 : i32 to index
      %c0_14 = arith.constant 0 : index
      %c0_15 = arith.constant 0 : index
      %21 = vector.load %arg1[%c0_13, %20, %c0_14, %c0_15] : memref<1x17x17x24xbf16, #tpu.memory_space<vmem>>, vector<1x1x17x24xbf16>
      %22 = vector.shape_cast %21 : vector<1x1x17x24xbf16> to vector<1x17x24xbf16>
      %23 = vector.shape_cast %22 : vector<1x17x24xbf16> to vector<17x24xbf16>
      %24 = vector.extract_strided_slice %23 {offsets = [0, 0], sizes = [16, 24], strides = [1, 1]} : vector<17x24xbf16> to vector<16x24xbf16>
      %c2 = arith.constant 2 : index
      %c0_16 = arith.constant 0 : index
      %c0_17 = arith.constant 0 : index
      %25 = vector.load %arg2[%c2, %c0_16, %c0_17] : memref<4x24x8xbf16, #tpu.memory_space<vmem>>, vector<1x24x8xbf16>
      %26 = vector.shape_cast %25 : vector<1x24x8xbf16> to vector<24x8xbf16>
      %cst_18 = arith.constant dense<0.000000e+00> : vector<16x8xf32>
      %27 = tpu.matmul %24, %26, %cst_18 {dimension_numbers = #tpu.dot_dimension_numbers<[1], [0], [0], [1], [0, 0, 1, 1], [], []>} : vector<16x24xbf16>, vector<24x8xbf16>, vector<16x8xf32> -> vector<16x8xf32>
      %28 = arith.addf %18, %27 : vector<16x8xf32>
      %29 = vector.extract_strided_slice %23 {offsets = [1, 0], sizes = [16, 24], strides = [1, 1]} : vector<17x24xbf16> to vector<16x24xbf16>
      %c3 = arith.constant 3 : index
      %c0_19 = arith.constant 0 : index
      %c0_20 = arith.constant 0 : index
      %30 = vector.load %arg2[%c3, %c0_19, %c0_20] : memref<4x24x8xbf16, #tpu.memory_space<vmem>>, vector<1x24x8xbf16>
      %31 = vector.shape_cast %30 : vector<1x24x8xbf16> to vector<24x8xbf16>
      %cst_21 = arith.constant dense<0.000000e+00> : vector<16x8xf32>
      %32 = tpu.matmul %29, %31, %cst_21 {dimension_numbers = #tpu.dot_dimension_numbers<[1], [0], [0], [1], [0, 0, 1, 1], [], []>} : vector<16x24xbf16>, vector<24x8xbf16>, vector<16x8xf32> -> vector<16x8xf32>
      %33 = arith.addf %28, %32 : vector<16x8xf32>
      %cst_22 = arith.constant 0.000000e+00 : f32
      %34 = vector.broadcast %cst_22 : f32 to vector<16x8xf32>
      %35 = arith.cmpf ogt, %33, %34 : vector<16x8xf32>
      %cst_23 = arith.constant 2.000000e-01 : f32
      %36 = vector.broadcast %cst_23 : f32 to vector<16x8xf32>
      %37 = arith.mulf %36, %33 : vector<16x8xf32>
      %38 = arith.select %35, %33, %37 : vector<16x8xi1>, vector<16x8xf32>
      %39 = vector.shape_cast %38 : vector<16x8xf32> to vector<1x16x8xf32>
      %40 = arith.truncf %39 : vector<1x16x8xf32> to vector<1x16x8xbf16>
      %c0_24 = arith.constant 0 : index
      %41 = arith.index_cast %arg5 : i32 to index
      %c0_25 = arith.constant 0 : index
      %c0_26 = arith.constant 0 : index
      %42 = vector.load %arg4[%c0_24, %41, %c0_25, %c0_26] : memref<1x16x16x8xbf16, #tpu.memory_space<vmem>>, vector<1x1x16x8xbf16>
      %43 = vector.shape_cast %42 : vector<1x1x16x8xbf16> to vector<1x16x8xbf16>
      %44 = vector.shape_cast %40 : vector<1x16x8xbf16> to vector<1x1x16x8xbf16>
      tpu.vector_store %arg4[%c0_24, %41, %c0_25, %c0_26], %44 {strides = array<i32>} : memref<1x16x16x8xbf16, #tpu.memory_space<vmem>>, vector<1x1x16x8xbf16>,
    }
    %c16_i32_1 = arith.constant 16 : i32
    return
  }
  func.func @transform_0(%arg0: i32) -> (i32, i32, i32, i32) {
    %c0_i32 = arith.constant 0 : i32
    %c0_i32_0 = arith.constant 0 : i32
    %c0_i32_1 = arith.constant 0 : i32
    %c0_i32_2 = arith.constant 0 : i32
    return %arg0, %c0_i32, %c0_i32_0, %c0_i32_1 : i32, i32, i32, i32
  }
  func.func @transform_1(%arg0: i32) -> (i32, i32, i32) {
    %c0_i32 = arith.constant 0 : i32
    %c0_i32_0 = arith.constant 0 : i32
    %c0_i32_1 = arith.constant 0 : i32
    %c0_i32_2 = arith.constant 0 : i32
    return %c0_i32, %c0_i32_0, %c0_i32_1 : i32, i32, i32
  }
  func.func @transform_2(%arg0: i32) -> (i32, i32) {
    %c0_i32 = arith.constant 0 : i32
    %c0_i32_0 = arith.constant 0 : i32
    %c0_i32_1 = arith.constant 0 : i32
    return %c0_i32, %c0_i32_0 : i32, i32
  }
  func.func @transform_3(%arg0: i32) -> (i32, i32, i32, i32) {
    %c0_i32 = arith.constant 0 : i32
    %c0_i32_0 = arith.constant 0 : i32
    %c0_i32_1 = arith.constant 0 : i32
    %c0_i32_2 = arith.constant 0 : i32
    return %arg0, %c0_i32, %c0_i32_0, %c0_i32_1 : i32, i32, i32, i32
  }
}

module attributes {stable_mosaic.version = 11 : i64} {
  func.func @_conv_shift_kernel(%arg0: i32, %arg1: memref<1x9x9x32xbf16, #tpu.memory_space<vmem>>, %arg2: memref<4x32x16xbf16, #tpu.memory_space<vmem>>, %arg3: memref<1x16xf32, #tpu.memory_space<vmem>>, %arg4: memref<1x8x8x16xbf16, #tpu.memory_space<vmem>>) attributes {dimension_semantics = [#tpu.dimension_semantics<parallel>], iteration_bounds = array<i64: 2>, scalar_prefetch = 0 : i64, scratch_operands = 0 : i64, tpu.core_type = #tpu.core_type<tc>, window_params = [{transform_indices = @transform_0, window_bounds = array<i64: 1, 9, 9, 32>}, {pipeline_mode = #tpu.pipeline_mode<synchronous>, transform_indices = @transform_1, window_bounds = array<i64: 4, 32, 16>}, {pipeline_mode = #tpu.pipeline_mode<synchronous>, transform_indices = @transform_2, window_bounds = array<i64: 1, 16>}, {transform_indices = @transform_3, window_bounds = array<i64: 1, 8, 8, 16>}]} {
    %c0 = arith.constant 0 : index
    %c0_0 = arith.constant 0 : index
    %0 = vector.load %arg3[%c0, %c0_0] : memref<1x16xf32, #tpu.memory_space<vmem>>, vector<1x16xf32>
    %1 = vector.shape_cast %0 : vector<1x16xf32> to vector<1x16xf32>
    %2 = vector.broadcast %1 : vector<1x16xf32> to vector<8x16xf32>
    %c0_i32 = arith.constant 0 : i32
    %c8_i32 = arith.constant 8 : i32
    %3 = arith.addi %c0_i32, %c8_i32 : i32
    %c1_i32 = arith.constant 1 : i32
    scf.for %arg5 = %c0_i32 to %3 step %c1_i32  : i32 {
      %c0_i32_2 = arith.constant 0 : i32
      %4 = arith.addi %arg5, %c0_i32_2 : i32
      %c0_3 = arith.constant 0 : index
      %5 = arith.index_cast %4 : i32 to index
      %c0_4 = arith.constant 0 : index
      %c0_5 = arith.constant 0 : index
      %6 = vector.load %arg1[%c0_3, %5, %c0_4, %c0_5] : memref<1x9x9x32xbf16, #tpu.memory_space<vmem>>, vector<1x1x9x32xbf16>
      %7 = vector.shape_cast %6 : vector<1x1x9x32xbf16> to vector<1x9x32xbf16>
      %8 = vector.shape_cast %7 : vector<1x9x32xbf16> to vector<9x32xbf16>
      %9 = vector.extract_strided_slice %8 {offsets = [0, 0], sizes = [8, 32], strides = [1, 1]} : vector<9x32xbf16> to vector<8x32xbf16>
      %c0_6 = arith.constant 0 : index
      %c0_7 = arith.constant 0 : index
      %c0_8 = arith.constant 0 : index
      %10 = vector.load %arg2[%c0_6, %c0_7, %c0_8] : memref<4x32x16xbf16, #tpu.memory_space<vmem>>, vector<1x32x16xbf16>
      %11 = vector.shape_cast %10 : vector<1x32x16xbf16> to vector<32x16xbf16>
      %cst = arith.constant dense<0.000000e+00> : vector<8x16xf32>
      %12 = tpu.matmul %9, %11, %cst {dimension_numbers = #tpu.dot_dimension_numbers<[1], [0], [0], [1], [0, 0, 1, 1], [], []>} : vector<8x32xbf16>, vector<32x16xbf16>, vector<8x16xf32> -> vector<8x16xf32>
      %13 = arith.addf %2, %12 : vector<8x16xf32>
      %14 = vector.extract_strided_slice %8 {offsets = [1, 0], sizes = [8, 32], strides = [1, 1]} : vector<9x32xbf16> to vector<8x32xbf16>
      %c1 = arith.constant 1 : index
      %c0_9 = arith.constant 0 : index
      %c0_10 = arith.constant 0 : index
      %15 = vector.load %arg2[%c1, %c0_9, %c0_10] : memref<4x32x16xbf16, #tpu.memory_space<vmem>>, vector<1x32x16xbf16>
      %16 = vector.shape_cast %15 : vector<1x32x16xbf16> to vector<32x16xbf16>
      %cst_11 = arith.constant dense<0.000000e+00> : vector<8x16xf32>
      %17 = tpu.matmul %14, %16, %cst_11 {dimension_numbers = #tpu.dot_dimension_numbers<[1], [0], [0], [1], [0, 0, 1, 1], [], []>} : vector<8x32xbf16>, vector<32x16xbf16>, vector<8x16xf32> -> vector<8x16xf32>
      %18 = arith.addf %13, %17 : vector<8x16xf32>
      %c1_i32_12 = arith.constant 1 : i32
      %19 = arith.addi %arg5, %c1_i32_12 : i32
      %c0_13 = arith.constant 0 : index
      %20 = arith.index_cast %19 : i32 to index
      %c0_14 = arith.constant 0 : index
      %c0_15 = arith.constant 0 : index
      %21 = vector.load %arg1[%c0_13, %20, %c0_14, %c0_15] : memref<1x9x9x32xbf16, #tpu.memory_space<vmem>>, vector<1x1x9x32xbf16>
      %22 = vector.shape_cast %21 : vector<1x1x9x32xbf16> to vector<1x9x32xbf16>
      %23 = vector.shape_cast %22 : vector<1x9x32xbf16> to vector<9x32xbf16>
      %24 = vector.extract_strided_slice %23 {offsets = [0, 0], sizes = [8, 32], strides = [1, 1]} : vector<9x32xbf16> to vector<8x32xbf16>
      %c2 = arith.constant 2 : index
      %c0_16 = arith.constant 0 : index
      %c0_17 = arith.constant 0 : index
      %25 = vector.load %arg2[%c2, %c0_16, %c0_17] : memref<4x32x16xbf16, #tpu.memory_space<vmem>>, vector<1x32x16xbf16>
      %26 = vector.shape_cast %25 : vector<1x32x16xbf16> to vector<32x16xbf16>
      %cst_18 = arith.constant dense<0.000000e+00> : vector<8x16xf32>
      %27 = tpu.matmul %24, %26, %cst_18 {dimension_numbers = #tpu.dot_dimension_numbers<[1], [0], [0], [1], [0, 0, 1, 1], [], []>} : vector<8x32xbf16>, vector<32x16xbf16>, vector<8x16xf32> -> vector<8x16xf32>
      %28 = arith.addf %18, %27 : vector<8x16xf32>
      %29 = vector.extract_strided_slice %23 {offsets = [1, 0], sizes = [8, 32], strides = [1, 1]} : vector<9x32xbf16> to vector<8x32xbf16>
      %c3 = arith.constant 3 : index
      %c0_19 = arith.constant 0 : index
      %c0_20 = arith.constant 0 : index
      %30 = vector.load %arg2[%c3, %c0_19, %c0_20] : memref<4x32x16xbf16, #tpu.memory_space<vmem>>, vector<1x32x16xbf16>
      %31 = vector.shape_cast %30 : vector<1x32x16xbf16> to vector<32x16xbf16>
      %cst_21 = arith.constant dense<0.000000e+00> : vector<8x16xf32>
      %32 = tpu.matmul %29, %31, %cst_21 {dimension_numbers = #tpu.dot_dimension_numbers<[1], [0], [0], [1], [0, 0, 1, 1], [], []>} : vector<8x32xbf16>, vector<32x16xbf16>, vector<8x16xf32> -> vector<8x16xf32>
      %33 = arith.addf %28, %32 : vector<8x16xf32>
      %34 = vector.shape_cast %33 : vector<8x16xf32> to vector<1x8x16xf32>
      %35 = arith.truncf %34 : vector<1x8x16xf32> to vector<1x8x16xbf16>
      %c0_22 = arith.constant 0 : index
      %36 = arith.index_cast %arg5 : i32 to index
      %c0_23 = arith.constant 0 : index
      %c0_24 = arith.constant 0 : index
      %37 = vector.load %arg4[%c0_22, %36, %c0_23, %c0_24] : memref<1x8x8x16xbf16, #tpu.memory_space<vmem>>, vector<1x1x8x16xbf16>
      %38 = vector.shape_cast %37 : vector<1x1x8x16xbf16> to vector<1x8x16xbf16>
      %39 = vector.shape_cast %35 : vector<1x8x16xbf16> to vector<1x1x8x16xbf16>
      tpu.vector_store %arg4[%c0_22, %36, %c0_23, %c0_24], %39 {strides = array<i32>} : memref<1x8x8x16xbf16, #tpu.memory_space<vmem>>, vector<1x1x8x16xbf16>,
    }
    %c8_i32_1 = arith.constant 8 : i32
    return
  }
  func.func @transform_0(%arg0: i32) -> (i32, i32, i32, i32) {
    %c0_i32 = arith.constant 0 : i32
    %c0_i32_0 = arith.constant 0 : i32
    %c0_i32_1 = arith.constant 0 : i32
    %c0_i32_2 = arith.constant 0 : i32
    return %arg0, %c0_i32, %c0_i32_0, %c0_i32_1 : i32, i32, i32, i32
  }
  func.func @transform_1(%arg0: i32) -> (i32, i32, i32) {
    %c0_i32 = arith.constant 0 : i32
    %c0_i32_0 = arith.constant 0 : i32
    %c0_i32_1 = arith.constant 0 : i32
    %c0_i32_2 = arith.constant 0 : i32
    return %c0_i32, %c0_i32_0, %c0_i32_1 : i32, i32, i32
  }
  func.func @transform_2(%arg0: i32) -> (i32, i32) {
    %c0_i32 = arith.constant 0 : i32
    %c0_i32_0 = arith.constant 0 : i32
    %c0_i32_1 = arith.constant 0 : i32
    return %c0_i32, %c0_i32_0 : i32, i32
  }
  func.func @transform_3(%arg0: i32) -> (i32, i32, i32, i32) {
    %c0_i32 = arith.constant 0 : i32
    %c0_i32_0 = arith.constant 0 : i32
    %c0_i32_1 = arith.constant 0 : i32
    %c0_i32_2 = arith.constant 0 : i32
    return %arg0, %c0_i32, %c0_i32_0, %c0_i32_1 : i32, i32, i32, i32
  }
}

module attributes {stable_mosaic.version = 11 : i64} {
  func.func @_conv_shift_kernel(%arg0: i32, %arg1: memref<1x5x5x64xbf16, #tpu.memory_space<vmem>>, %arg2: memref<4x64x32xbf16, #tpu.memory_space<vmem>>, %arg3: memref<1x32xf32, #tpu.memory_space<vmem>>, %arg4: memref<1x4x4x32xbf16, #tpu.memory_space<vmem>>) attributes {dimension_semantics = [#tpu.dimension_semantics<parallel>], iteration_bounds = array<i64: 2>, scalar_prefetch = 0 : i64, scratch_operands = 0 : i64, tpu.core_type = #tpu.core_type<tc>, window_params = [{transform_indices = @transform_0, window_bounds = array<i64: 1, 5, 5, 64>}, {pipeline_mode = #tpu.pipeline_mode<synchronous>, transform_indices = @transform_1, window_bounds = array<i64: 4, 64, 32>}, {pipeline_mode = #tpu.pipeline_mode<synchronous>, transform_indices = @transform_2, window_bounds = array<i64: 1, 32>}, {transform_indices = @transform_3, window_bounds = array<i64: 1, 4, 4, 32>}]} {
    %c0 = arith.constant 0 : index
    %c0_0 = arith.constant 0 : index
    %0 = vector.load %arg3[%c0, %c0_0] : memref<1x32xf32, #tpu.memory_space<vmem>>, vector<1x32xf32>
    %1 = vector.shape_cast %0 : vector<1x32xf32> to vector<1x32xf32>
    %2 = vector.broadcast %1 : vector<1x32xf32> to vector<4x32xf32>
    %c0_i32 = arith.constant 0 : i32
    %c4_i32 = arith.constant 4 : i32
    %3 = arith.addi %c0_i32, %c4_i32 : i32
    %c1_i32 = arith.constant 1 : i32
    scf.for %arg5 = %c0_i32 to %3 step %c1_i32  : i32 {
      %c0_i32_2 = arith.constant 0 : i32
      %4 = arith.addi %arg5, %c0_i32_2 : i32
      %c0_3 = arith.constant 0 : index
      %5 = arith.index_cast %4 : i32 to index
      %c0_4 = arith.constant 0 : index
      %c0_5 = arith.constant 0 : index
      %6 = vector.load %arg1[%c0_3, %5, %c0_4, %c0_5] : memref<1x5x5x64xbf16, #tpu.memory_space<vmem>>, vector<1x1x5x64xbf16>
      %7 = vector.shape_cast %6 : vector<1x1x5x64xbf16> to vector<1x5x64xbf16>
      %8 = vector.shape_cast %7 : vector<1x5x64xbf16> to vector<5x64xbf16>
      %9 = vector.extract_strided_slice %8 {offsets = [0, 0], sizes = [4, 64], strides = [1, 1]} : vector<5x64xbf16> to vector<4x64xbf16>
      %c0_6 = arith.constant 0 : index
      %c0_7 = arith.constant 0 : index
      %c0_8 = arith.constant 0 : index
      %10 = vector.load %arg2[%c0_6, %c0_7, %c0_8] : memref<4x64x32xbf16, #tpu.memory_space<vmem>>, vector<1x64x32xbf16>
      %11 = vector.shape_cast %10 : vector<1x64x32xbf16> to vector<64x32xbf16>
      %cst = arith.constant dense<0.000000e+00> : vector<4x32xf32>
      %12 = tpu.matmul %9, %11, %cst {dimension_numbers = #tpu.dot_dimension_numbers<[1], [0], [0], [1], [0, 0, 1, 1], [], []>} : vector<4x64xbf16>, vector<64x32xbf16>, vector<4x32xf32> -> vector<4x32xf32>
      %13 = arith.addf %2, %12 : vector<4x32xf32>
      %14 = vector.extract_strided_slice %8 {offsets = [1, 0], sizes = [4, 64], strides = [1, 1]} : vector<5x64xbf16> to vector<4x64xbf16>
      %c1 = arith.constant 1 : index
      %c0_9 = arith.constant 0 : index
      %c0_10 = arith.constant 0 : index
      %15 = vector.load %arg2[%c1, %c0_9, %c0_10] : memref<4x64x32xbf16, #tpu.memory_space<vmem>>, vector<1x64x32xbf16>
      %16 = vector.shape_cast %15 : vector<1x64x32xbf16> to vector<64x32xbf16>
      %cst_11 = arith.constant dense<0.000000e+00> : vector<4x32xf32>
      %17 = tpu.matmul %14, %16, %cst_11 {dimension_numbers = #tpu.dot_dimension_numbers<[1], [0], [0], [1], [0, 0, 1, 1], [], []>} : vector<4x64xbf16>, vector<64x32xbf16>, vector<4x32xf32> -> vector<4x32xf32>
      %18 = arith.addf %13, %17 : vector<4x32xf32>
      %c1_i32_12 = arith.constant 1 : i32
      %19 = arith.addi %arg5, %c1_i32_12 : i32
      %c0_13 = arith.constant 0 : index
      %20 = arith.index_cast %19 : i32 to index
      %c0_14 = arith.constant 0 : index
      %c0_15 = arith.constant 0 : index
      %21 = vector.load %arg1[%c0_13, %20, %c0_14, %c0_15] : memref<1x5x5x64xbf16, #tpu.memory_space<vmem>>, vector<1x1x5x64xbf16>
      %22 = vector.shape_cast %21 : vector<1x1x5x64xbf16> to vector<1x5x64xbf16>
      %23 = vector.shape_cast %22 : vector<1x5x64xbf16> to vector<5x64xbf16>
      %24 = vector.extract_strided_slice %23 {offsets = [0, 0], sizes = [4, 64], strides = [1, 1]} : vector<5x64xbf16> to vector<4x64xbf16>
      %c2 = arith.constant 2 : index
      %c0_16 = arith.constant 0 : index
      %c0_17 = arith.constant 0 : index
      %25 = vector.load %arg2[%c2, %c0_16, %c0_17] : memref<4x64x32xbf16, #tpu.memory_space<vmem>>, vector<1x64x32xbf16>
      %26 = vector.shape_cast %25 : vector<1x64x32xbf16> to vector<64x32xbf16>
      %cst_18 = arith.constant dense<0.000000e+00> : vector<4x32xf32>
      %27 = tpu.matmul %24, %26, %cst_18 {dimension_numbers = #tpu.dot_dimension_numbers<[1], [0], [0], [1], [0, 0, 1, 1], [], []>} : vector<4x64xbf16>, vector<64x32xbf16>, vector<4x32xf32> -> vector<4x32xf32>
      %28 = arith.addf %18, %27 : vector<4x32xf32>
      %29 = vector.extract_strided_slice %23 {offsets = [1, 0], sizes = [4, 64], strides = [1, 1]} : vector<5x64xbf16> to vector<4x64xbf16>
      %c3 = arith.constant 3 : index
      %c0_19 = arith.constant 0 : index
      %c0_20 = arith.constant 0 : index
      %30 = vector.load %arg2[%c3, %c0_19, %c0_20] : memref<4x64x32xbf16, #tpu.memory_space<vmem>>, vector<1x64x32xbf16>
      %31 = vector.shape_cast %30 : vector<1x64x32xbf16> to vector<64x32xbf16>
      %cst_21 = arith.constant dense<0.000000e+00> : vector<4x32xf32>
      %32 = tpu.matmul %29, %31, %cst_21 {dimension_numbers = #tpu.dot_dimension_numbers<[1], [0], [0], [1], [0, 0, 1, 1], [], []>} : vector<4x64xbf16>, vector<64x32xbf16>, vector<4x32xf32> -> vector<4x32xf32>
      %33 = arith.addf %28, %32 : vector<4x32xf32>
      %34 = vector.shape_cast %33 : vector<4x32xf32> to vector<1x4x32xf32>
      %35 = arith.truncf %34 : vector<1x4x32xf32> to vector<1x4x32xbf16>
      %c0_22 = arith.constant 0 : index
      %36 = arith.index_cast %arg5 : i32 to index
      %c0_23 = arith.constant 0 : index
      %c0_24 = arith.constant 0 : index
      %37 = vector.load %arg4[%c0_22, %36, %c0_23, %c0_24] : memref<1x4x4x32xbf16, #tpu.memory_space<vmem>>, vector<1x1x4x32xbf16>
      %38 = vector.shape_cast %37 : vector<1x1x4x32xbf16> to vector<1x4x32xbf16>
      %39 = vector.shape_cast %35 : vector<1x4x32xbf16> to vector<1x1x4x32xbf16>
      tpu.vector_store %arg4[%c0_22, %36, %c0_23, %c0_24], %39 {strides = array<i32>} : memref<1x4x4x32xbf16, #tpu.memory_space<vmem>>, vector<1x1x4x32xbf16>,
    }
    %c4_i32_1 = arith.constant 4 : i32
    return
  }
  func.func @transform_0(%arg0: i32) -> (i32, i32, i32, i32) {
    %c0_i32 = arith.constant 0 : i32
    %c0_i32_0 = arith.constant 0 : i32
    %c0_i32_1 = arith.constant 0 : i32
    %c0_i32_2 = arith.constant 0 : i32
    return %arg0, %c0_i32, %c0_i32_0, %c0_i32_1 : i32, i32, i32, i32
  }
  func.func @transform_1(%arg0: i32) -> (i32, i32, i32) {
    %c0_i32 = arith.constant 0 : i32
    %c0_i32_0 = arith.constant 0 : i32
    %c0_i32_1 = arith.constant 0 : i32
    %c0_i32_2 = arith.constant 0 : i32
    return %c0_i32, %c0_i32_0, %c0_i32_1 : i32, i32, i32
  }
  func.func @transform_2(%arg0: i32) -> (i32, i32) {
    %c0_i32 = arith.constant 0 : i32
    %c0_i32_0 = arith.constant 0 : i32
    %c0_i32_1 = arith.constant 0 : i32
    return %c0_i32, %c0_i32_0 : i32, i32
  }
  func.func @transform_3(%arg0: i32) -> (i32, i32, i32, i32) {
    %c0_i32 = arith.constant 0 : i32
    %c0_i32_0 = arith.constant 0 : i32
    %c0_i32_1 = arith.constant 0 : i32
    %c0_i32_2 = arith.constant 0 : i32
    return %arg0, %c0_i32, %c0_i32_0, %c0_i32_1 : i32, i32, i32, i32
  }
}

module attributes {stable_mosaic.version = 11 : i64} {
  func.func @_conv_shift_kernel(%arg0: i32, %arg1: memref<1x6x6x32xbf16, #tpu.memory_space<vmem>>, %arg2: memref<16x32x64xbf16, #tpu.memory_space<vmem>>, %arg3: memref<1x64xf32, #tpu.memory_space<vmem>>, %arg4: memref<1x3x3x64xbf16, #tpu.memory_space<vmem>>) attributes {dimension_semantics = [#tpu.dimension_semantics<parallel>], iteration_bounds = array<i64: 2>, scalar_prefetch = 0 : i64, scratch_operands = 0 : i64, tpu.core_type = #tpu.core_type<tc>, window_params = [{transform_indices = @transform_0, window_bounds = array<i64: 1, 6, 6, 32>}, {pipeline_mode = #tpu.pipeline_mode<synchronous>, transform_indices = @transform_1, window_bounds = array<i64: 16, 32, 64>}, {pipeline_mode = #tpu.pipeline_mode<synchronous>, transform_indices = @transform_2, window_bounds = array<i64: 1, 64>}, {transform_indices = @transform_3, window_bounds = array<i64: 1, 3, 3, 64>}]} {
    %c0 = arith.constant 0 : index
    %c0_0 = arith.constant 0 : index
    %0 = vector.load %arg3[%c0, %c0_0] : memref<1x64xf32, #tpu.memory_space<vmem>>, vector<1x64xf32>
    %1 = vector.shape_cast %0 : vector<1x64xf32> to vector<1x64xf32>
    %2 = vector.broadcast %1 : vector<1x64xf32> to vector<3x64xf32>
    %c0_i32 = arith.constant 0 : i32
    %c3_i32 = arith.constant 3 : i32
    %3 = arith.addi %c0_i32, %c3_i32 : i32
    %c1_i32 = arith.constant 1 : i32
    scf.for %arg5 = %c0_i32 to %3 step %c1_i32  : i32 {
      %c0_i32_2 = arith.constant 0 : i32
      %4 = arith.addi %arg5, %c0_i32_2 : i32
      %c0_3 = arith.constant 0 : index
      %5 = arith.index_cast %4 : i32 to index
      %c0_4 = arith.constant 0 : index
      %c0_5 = arith.constant 0 : index
      %6 = vector.load %arg1[%c0_3, %5, %c0_4, %c0_5] : memref<1x6x6x32xbf16, #tpu.memory_space<vmem>>, vector<1x1x6x32xbf16>
      %7 = vector.shape_cast %6 : vector<1x1x6x32xbf16> to vector<1x6x32xbf16>
      %8 = vector.shape_cast %7 : vector<1x6x32xbf16> to vector<6x32xbf16>
      %9 = vector.extract_strided_slice %8 {offsets = [0, 0], sizes = [3, 32], strides = [1, 1]} : vector<6x32xbf16> to vector<3x32xbf16>
      %c0_6 = arith.constant 0 : index
      %c0_7 = arith.constant 0 : index
      %c0_8 = arith.constant 0 : index
      %10 = vector.load %arg2[%c0_6, %c0_7, %c0_8] : memref<16x32x64xbf16, #tpu.memory_space<vmem>>, vector<1x32x64xbf16>
      %11 = vector.shape_cast %10 : vector<1x32x64xbf16> to vector<32x64xbf16>
      %cst = arith.constant dense<0.000000e+00> : vector<3x64xf32>
      %12 = tpu.matmul %9, %11, %cst {dimension_numbers = #tpu.dot_dimension_numbers<[1], [0], [0], [1], [0, 0, 1, 1], [], []>} : vector<3x32xbf16>, vector<32x64xbf16>, vector<3x64xf32> -> vector<3x64xf32>
      %13 = arith.addf %2, %12 : vector<3x64xf32>
      %14 = vector.extract_strided_slice %8 {offsets = [1, 0], sizes = [3, 32], strides = [1, 1]} : vector<6x32xbf16> to vector<3x32xbf16>
      %c1 = arith.constant 1 : index
      %c0_9 = arith.constant 0 : index
      %c0_10 = arith.constant 0 : index
      %15 = vector.load %arg2[%c1, %c0_9, %c0_10] : memref<16x32x64xbf16, #tpu.memory_space<vmem>>, vector<1x32x64xbf16>
      %16 = vector.shape_cast %15 : vector<1x32x64xbf16> to vector<32x64xbf16>
      %cst_11 = arith.constant dense<0.000000e+00> : vector<3x64xf32>
      %17 = tpu.matmul %14, %16, %cst_11 {dimension_numbers = #tpu.dot_dimension_numbers<[1], [0], [0], [1], [0, 0, 1, 1], [], []>} : vector<3x32xbf16>, vector<32x64xbf16>, vector<3x64xf32> -> vector<3x64xf32>
      %18 = arith.addf %13, %17 : vector<3x64xf32>
      %19 = vector.extract_strided_slice %8 {offsets = [2, 0], sizes = [3, 32], strides = [1, 1]} : vector<6x32xbf16> to vector<3x32xbf16>
      %c2 = arith.constant 2 : index
      %c0_12 = arith.constant 0 : index
      %c0_13 = arith.constant 0 : index
      %20 = vector.load %arg2[%c2, %c0_12, %c0_13] : memref<16x32x64xbf16, #tpu.memory_space<vmem>>, vector<1x32x64xbf16>
      %21 = vector.shape_cast %20 : vector<1x32x64xbf16> to vector<32x64xbf16>
      %cst_14 = arith.constant dense<0.000000e+00> : vector<3x64xf32>
      %22 = tpu.matmul %19, %21, %cst_14 {dimension_numbers = #tpu.dot_dimension_numbers<[1], [0], [0], [1], [0, 0, 1, 1], [], []>} : vector<3x32xbf16>, vector<32x64xbf16>, vector<3x64xf32> -> vector<3x64xf32>
      %23 = arith.addf %18, %22 : vector<3x64xf32>
      %24 = vector.extract_strided_slice %8 {offsets = [3, 0], sizes = [3, 32], strides = [1, 1]} : vector<6x32xbf16> to vector<3x32xbf16>
      %c3 = arith.constant 3 : index
      %c0_15 = arith.constant 0 : index
      %c0_16 = arith.constant 0 : index
      %25 = vector.load %arg2[%c3, %c0_15, %c0_16] : memref<16x32x64xbf16, #tpu.memory_space<vmem>>, vector<1x32x64xbf16>
      %26 = vector.shape_cast %25 : vector<1x32x64xbf16> to vector<32x64xbf16>
      %cst_17 = arith.constant dense<0.000000e+00> : vector<3x64xf32>
      %27 = tpu.matmul %24, %26, %cst_17 {dimension_numbers = #tpu.dot_dimension_numbers<[1], [0], [0], [1], [0, 0, 1, 1], [], []>} : vector<3x32xbf16>, vector<32x64xbf16>, vector<3x64xf32> -> vector<3x64xf32>
      %28 = arith.addf %23, %27 : vector<3x64xf32>
      %c1_i32_18 = arith.constant 1 : i32
      %29 = arith.addi %arg5, %c1_i32_18 : i32
      %c0_19 = arith.constant 0 : index
      %30 = arith.index_cast %29 : i32 to index
      %c0_20 = arith.constant 0 : index
      %c0_21 = arith.constant 0 : index
      %31 = vector.load %arg1[%c0_19, %30, %c0_20, %c0_21] : memref<1x6x6x32xbf16, #tpu.memory_space<vmem>>, vector<1x1x6x32xbf16>
      %32 = vector.shape_cast %31 : vector<1x1x6x32xbf16> to vector<1x6x32xbf16>
      %33 = vector.shape_cast %32 : vector<1x6x32xbf16> to vector<6x32xbf16>
      %34 = vector.extract_strided_slice %33 {offsets = [0, 0], sizes = [3, 32], strides = [1, 1]} : vector<6x32xbf16> to vector<3x32xbf16>
      %c4 = arith.constant 4 : index
      %c0_22 = arith.constant 0 : index
      %c0_23 = arith.constant 0 : index
      %35 = vector.load %arg2[%c4, %c0_22, %c0_23] : memref<16x32x64xbf16, #tpu.memory_space<vmem>>, vector<1x32x64xbf16>
      %36 = vector.shape_cast %35 : vector<1x32x64xbf16> to vector<32x64xbf16>
      %cst_24 = arith.constant dense<0.000000e+00> : vector<3x64xf32>
      %37 = tpu.matmul %34, %36, %cst_24 {dimension_numbers = #tpu.dot_dimension_numbers<[1], [0], [0], [1], [0, 0, 1, 1], [], []>} : vector<3x32xbf16>, vector<32x64xbf16>, vector<3x64xf32> -> vector<3x64xf32>
      %38 = arith.addf %28, %37 : vector<3x64xf32>
      %39 = vector.extract_strided_slice %33 {offsets = [1, 0], sizes = [3, 32], strides = [1, 1]} : vector<6x32xbf16> to vector<3x32xbf16>
      %c5 = arith.constant 5 : index
      %c0_25 = arith.constant 0 : index
      %c0_26 = arith.constant 0 : index
      %40 = vector.load %arg2[%c5, %c0_25, %c0_26] : memref<16x32x64xbf16, #tpu.memory_space<vmem>>, vector<1x32x64xbf16>
      %41 = vector.shape_cast %40 : vector<1x32x64xbf16> to vector<32x64xbf16>
      %cst_27 = arith.constant dense<0.000000e+00> : vector<3x64xf32>
      %42 = tpu.matmul %39, %41, %cst_27 {dimension_numbers = #tpu.dot_dimension_numbers<[1], [0], [0], [1], [0, 0, 1, 1], [], []>} : vector<3x32xbf16>, vector<32x64xbf16>, vector<3x64xf32> -> vector<3x64xf32>
      %43 = arith.addf %38, %42 : vector<3x64xf32>
      %44 = vector.extract_strided_slice %33 {offsets = [2, 0], sizes = [3, 32], strides = [1, 1]} : vector<6x32xbf16> to vector<3x32xbf16>
      %c6 = arith.constant 6 : index
      %c0_28 = arith.constant 0 : index
      %c0_29 = arith.constant 0 : index
      %45 = vector.load %arg2[%c6, %c0_28, %c0_29] : memref<16x32x64xbf16, #tpu.memory_space<vmem>>, vector<1x32x64xbf16>
      %46 = vector.shape_cast %45 : vector<1x32x64xbf16> to vector<32x64xbf16>
      %cst_30 = arith.constant dense<0.000000e+00> : vector<3x64xf32>
      %47 = tpu.matmul %44, %46, %cst_30 {dimension_numbers = #tpu.dot_dimension_numbers<[1], [0], [0], [1], [0, 0, 1, 1], [], []>} : vector<3x32xbf16>, vector<32x64xbf16>, vector<3x64xf32> -> vector<3x64xf32>
      %48 = arith.addf %43, %47 : vector<3x64xf32>
      %49 = vector.extract_strided_slice %33 {offsets = [3, 0], sizes = [3, 32], strides = [1, 1]} : vector<6x32xbf16> to vector<3x32xbf16>
      %c7 = arith.constant 7 : index
      %c0_31 = arith.constant 0 : index
      %c0_32 = arith.constant 0 : index
      %50 = vector.load %arg2[%c7, %c0_31, %c0_32] : memref<16x32x64xbf16, #tpu.memory_space<vmem>>, vector<1x32x64xbf16>
      %51 = vector.shape_cast %50 : vector<1x32x64xbf16> to vector<32x64xbf16>
      %cst_33 = arith.constant dense<0.000000e+00> : vector<3x64xf32>
      %52 = tpu.matmul %49, %51, %cst_33 {dimension_numbers = #tpu.dot_dimension_numbers<[1], [0], [0], [1], [0, 0, 1, 1], [], []>} : vector<3x32xbf16>, vector<32x64xbf16>, vector<3x64xf32> -> vector<3x64xf32>
      %53 = arith.addf %48, %52 : vector<3x64xf32>
      %c2_i32 = arith.constant 2 : i32
      %54 = arith.addi %arg5, %c2_i32 : i32
      %c0_34 = arith.constant 0 : index
      %55 = arith.index_cast %54 : i32 to index
      %c0_35 = arith.constant 0 : index
      %c0_36 = arith.constant 0 : index
      %56 = vector.load %arg1[%c0_34, %55, %c0_35, %c0_36] : memref<1x6x6x32xbf16, #tpu.memory_space<vmem>>, vector<1x1x6x32xbf16>
      %57 = vector.shape_cast %56 : vector<1x1x6x32xbf16> to vector<1x6x32xbf16>
      %58 = vector.shape_cast %57 : vector<1x6x32xbf16> to vector<6x32xbf16>
      %59 = vector.extract_strided_slice %58 {offsets = [0, 0], sizes = [3, 32], strides = [1, 1]} : vector<6x32xbf16> to vector<3x32xbf16>
      %c8 = arith.constant 8 : index
      %c0_37 = arith.constant 0 : index
      %c0_38 = arith.constant 0 : index
      %60 = vector.load %arg2[%c8, %c0_37, %c0_38] : memref<16x32x64xbf16, #tpu.memory_space<vmem>>, vector<1x32x64xbf16>
      %61 = vector.shape_cast %60 : vector<1x32x64xbf16> to vector<32x64xbf16>
      %cst_39 = arith.constant dense<0.000000e+00> : vector<3x64xf32>
      %62 = tpu.matmul %59, %61, %cst_39 {dimension_numbers = #tpu.dot_dimension_numbers<[1], [0], [0], [1], [0, 0, 1, 1], [], []>} : vector<3x32xbf16>, vector<32x64xbf16>, vector<3x64xf32> -> vector<3x64xf32>
      %63 = arith.addf %53, %62 : vector<3x64xf32>
      %64 = vector.extract_strided_slice %58 {offsets = [1, 0], sizes = [3, 32], strides = [1, 1]} : vector<6x32xbf16> to vector<3x32xbf16>
      %c9 = arith.constant 9 : index
      %c0_40 = arith.constant 0 : index
      %c0_41 = arith.constant 0 : index
      %65 = vector.load %arg2[%c9, %c0_40, %c0_41] : memref<16x32x64xbf16, #tpu.memory_space<vmem>>, vector<1x32x64xbf16>
      %66 = vector.shape_cast %65 : vector<1x32x64xbf16> to vector<32x64xbf16>
      %cst_42 = arith.constant dense<0.000000e+00> : vector<3x64xf32>
      %67 = tpu.matmul %64, %66, %cst_42 {dimension_numbers = #tpu.dot_dimension_numbers<[1], [0], [0], [1], [0, 0, 1, 1], [], []>} : vector<3x32xbf16>, vector<32x64xbf16>, vector<3x64xf32> -> vector<3x64xf32>
      %68 = arith.addf %63, %67 : vector<3x64xf32>
      %69 = vector.extract_strided_slice %58 {offsets = [2, 0], sizes = [3, 32], strides = [1, 1]} : vector<6x32xbf16> to vector<3x32xbf16>
      %c10 = arith.constant 10 : index
      %c0_43 = arith.constant 0 : index
      %c0_44 = arith.constant 0 : index
      %70 = vector.load %arg2[%c10, %c0_43, %c0_44] : memref<16x32x64xbf16, #tpu.memory_space<vmem>>, vector<1x32x64xbf16>
      %71 = vector.shape_cast %70 : vector<1x32x64xbf16> to vector<32x64xbf16>
      %cst_45 = arith.constant dense<0.000000e+00> : vector<3x64xf32>
      %72 = tpu.matmul %69, %71, %cst_45 {dimension_numbers = #tpu.dot_dimension_numbers<[1], [0], [0], [1], [0, 0, 1, 1], [], []>} : vector<3x32xbf16>, vector<32x64xbf16>, vector<3x64xf32> -> vector<3x64xf32>
      %73 = arith.addf %68, %72 : vector<3x64xf32>
      %74 = vector.extract_strided_slice %58 {offsets = [3, 0], sizes = [3, 32], strides = [1, 1]} : vector<6x32xbf16> to vector<3x32xbf16>
      %c11 = arith.constant 11 : index
      %c0_46 = arith.constant 0 : index
      %c0_47 = arith.constant 0 : index
      %75 = vector.load %arg2[%c11, %c0_46, %c0_47] : memref<16x32x64xbf16, #tpu.memory_space<vmem>>, vector<1x32x64xbf16>
      %76 = vector.shape_cast %75 : vector<1x32x64xbf16> to vector<32x64xbf16>
      %cst_48 = arith.constant dense<0.000000e+00> : vector<3x64xf32>
      %77 = tpu.matmul %74, %76, %cst_48 {dimension_numbers = #tpu.dot_dimension_numbers<[1], [0], [0], [1], [0, 0, 1, 1], [], []>} : vector<3x32xbf16>, vector<32x64xbf16>, vector<3x64xf32> -> vector<3x64xf32>
      %78 = arith.addf %73, %77 : vector<3x64xf32>
      %c3_i32_49 = arith.constant 3 : i32
      %79 = arith.addi %arg5, %c3_i32_49 : i32
      %c0_50 = arith.constant 0 : index
      %80 = arith.index_cast %79 : i32 to index
      %c0_51 = arith.constant 0 : index
      %c0_52 = arith.constant 0 : index
      %81 = vector.load %arg1[%c0_50, %80, %c0_51, %c0_52] : memref<1x6x6x32xbf16, #tpu.memory_space<vmem>>, vector<1x1x6x32xbf16>
      %82 = vector.shape_cast %81 : vector<1x1x6x32xbf16> to vector<1x6x32xbf16>
      %83 = vector.shape_cast %82 : vector<1x6x32xbf16> to vector<6x32xbf16>
      %84 = vector.extract_strided_slice %83 {offsets = [0, 0], sizes = [3, 32], strides = [1, 1]} : vector<6x32xbf16> to vector<3x32xbf16>
      %c12 = arith.constant 12 : index
      %c0_53 = arith.constant 0 : index
      %c0_54 = arith.constant 0 : index
      %85 = vector.load %arg2[%c12, %c0_53, %c0_54] : memref<16x32x64xbf16, #tpu.memory_space<vmem>>, vector<1x32x64xbf16>
      %86 = vector.shape_cast %85 : vector<1x32x64xbf16> to vector<32x64xbf16>
      %cst_55 = arith.constant dense<0.000000e+00> : vector<3x64xf32>
      %87 = tpu.matmul %84, %86, %cst_55 {dimension_numbers = #tpu.dot_dimension_numbers<[1], [0], [0], [1], [0, 0, 1, 1], [], []>} : vector<3x32xbf16>, vector<32x64xbf16>, vector<3x64xf32> -> vector<3x64xf32>
      %88 = arith.addf %78, %87 : vector<3x64xf32>
      %89 = vector.extract_strided_slice %83 {offsets = [1, 0], sizes = [3, 32], strides = [1, 1]} : vector<6x32xbf16> to vector<3x32xbf16>
      %c13 = arith.constant 13 : index
      %c0_56 = arith.constant 0 : index
      %c0_57 = arith.constant 0 : index
      %90 = vector.load %arg2[%c13, %c0_56, %c0_57] : memref<16x32x64xbf16, #tpu.memory_space<vmem>>, vector<1x32x64xbf16>
      %91 = vector.shape_cast %90 : vector<1x32x64xbf16> to vector<32x64xbf16>
      %cst_58 = arith.constant dense<0.000000e+00> : vector<3x64xf32>
      %92 = tpu.matmul %89, %91, %cst_58 {dimension_numbers = #tpu.dot_dimension_numbers<[1], [0], [0], [1], [0, 0, 1, 1], [], []>} : vector<3x32xbf16>, vector<32x64xbf16>, vector<3x64xf32> -> vector<3x64xf32>
      %93 = arith.addf %88, %92 : vector<3x64xf32>
      %94 = vector.extract_strided_slice %83 {offsets = [2, 0], sizes = [3, 32], strides = [1, 1]} : vector<6x32xbf16> to vector<3x32xbf16>
      %c14 = arith.constant 14 : index
      %c0_59 = arith.constant 0 : index
      %c0_60 = arith.constant 0 : index
      %95 = vector.load %arg2[%c14, %c0_59, %c0_60] : memref<16x32x64xbf16, #tpu.memory_space<vmem>>, vector<1x32x64xbf16>
      %96 = vector.shape_cast %95 : vector<1x32x64xbf16> to vector<32x64xbf16>
      %cst_61 = arith.constant dense<0.000000e+00> : vector<3x64xf32>
      %97 = tpu.matmul %94, %96, %cst_61 {dimension_numbers = #tpu.dot_dimension_numbers<[1], [0], [0], [1], [0, 0, 1, 1], [], []>} : vector<3x32xbf16>, vector<32x64xbf16>, vector<3x64xf32> -> vector<3x64xf32>
      %98 = arith.addf %93, %97 : vector<3x64xf32>
      %99 = vector.extract_strided_slice %83 {offsets = [3, 0], sizes = [3, 32], strides = [1, 1]} : vector<6x32xbf16> to vector<3x32xbf16>
      %c15 = arith.constant 15 : index
      %c0_62 = arith.constant 0 : index
      %c0_63 = arith.constant 0 : index
      %100 = vector.load %arg2[%c15, %c0_62, %c0_63] : memref<16x32x64xbf16, #tpu.memory_space<vmem>>, vector<1x32x64xbf16>
      %101 = vector.shape_cast %100 : vector<1x32x64xbf16> to vector<32x64xbf16>
      %cst_64 = arith.constant dense<0.000000e+00> : vector<3x64xf32>
      %102 = tpu.matmul %99, %101, %cst_64 {dimension_numbers = #tpu.dot_dimension_numbers<[1], [0], [0], [1], [0, 0, 1, 1], [], []>} : vector<3x32xbf16>, vector<32x64xbf16>, vector<3x64xf32> -> vector<3x64xf32>
      %103 = arith.addf %98, %102 : vector<3x64xf32>
      %104 = vector.shape_cast %103 : vector<3x64xf32> to vector<1x3x64xf32>
      %105 = arith.truncf %104 : vector<1x3x64xf32> to vector<1x3x64xbf16>
      %c0_65 = arith.constant 0 : index
      %106 = arith.index_cast %arg5 : i32 to index
      %c0_66 = arith.constant 0 : index
      %c0_67 = arith.constant 0 : index
      %107 = vector.load %arg4[%c0_65, %106, %c0_66, %c0_67] : memref<1x3x3x64xbf16, #tpu.memory_space<vmem>>, vector<1x1x3x64xbf16>
      %108 = vector.shape_cast %107 : vector<1x1x3x64xbf16> to vector<1x3x64xbf16>
      %109 = vector.shape_cast %105 : vector<1x3x64xbf16> to vector<1x1x3x64xbf16>
      tpu.vector_store %arg4[%c0_65, %106, %c0_66, %c0_67], %109 {strides = array<i32>} : memref<1x3x3x64xbf16, #tpu.memory_space<vmem>>, vector<1x1x3x64xbf16>,
    }
    %c3_i32_1 = arith.constant 3 : i32
    return
  }
  func.func @transform_0(%arg0: i32) -> (i32, i32, i32, i32) {
    %c0_i32 = arith.constant 0 : i32
    %c0_i32_0 = arith.constant 0 : i32
    %c0_i32_1 = arith.constant 0 : i32
    %c0_i32_2 = arith.constant 0 : i32
    return %arg0, %c0_i32, %c0_i32_0, %c0_i32_1 : i32, i32, i32, i32
  }
  func.func @transform_1(%arg0: i32) -> (i32, i32, i32) {
    %c0_i32 = arith.constant 0 : i32
    %c0_i32_0 = arith.constant 0 : i32
    %c0_i32_1 = arith.constant 0 : i32
    %c0_i32_2 = arith.constant 0 : i32
    return %c0_i32, %c0_i32_0, %c0_i32_1 : i32, i32, i32
  }
  func.func @transform_2(%arg0: i32) -> (i32, i32) {
    %c0_i32 = arith.constant 0 : i32
    %c0_i32_0 = arith.constant 0 : i32
    %c0_i32_1 = arith.constant 0 : i32
    return %c0_i32, %c0_i32_0 : i32, i32
  }
  func.func @transform_3(%arg0: i32) -> (i32, i32, i32, i32) {
    %c0_i32 = arith.constant 0 : i32
    %c0_i32_0 = arith.constant 0 : i32
    %c0_i32_1 = arith.constant 0 : i32
    %c0_i32_2 = arith.constant 0 : i32
    return %arg0, %c0_i32, %c0_i32_0, %c0_i32_1 : i32, i32, i32, i32
  }
}

module attributes {stable_mosaic.version = 11 : i64} {
  func.func @_conv_shift_kernel(%arg0: i32, %arg1: memref<1x5x5x64xbf16, #tpu.memory_space<vmem>>, %arg2: memref<16x64x1xbf16, #tpu.memory_space<vmem>>, %arg3: memref<1x1xf32, #tpu.memory_space<vmem>>, %arg4: memref<1x2x2x1xf32, #tpu.memory_space<vmem>>) attributes {dimension_semantics = [#tpu.dimension_semantics<parallel>], iteration_bounds = array<i64: 2>, scalar_prefetch = 0 : i64, scratch_operands = 0 : i64, tpu.core_type = #tpu.core_type<tc>, window_params = [{transform_indices = @transform_0, window_bounds = array<i64: 1, 5, 5, 64>}, {pipeline_mode = #tpu.pipeline_mode<synchronous>, transform_indices = @transform_1, window_bounds = array<i64: 16, 64, 1>}, {pipeline_mode = #tpu.pipeline_mode<synchronous>, transform_indices = @transform_2, window_bounds = array<i64: 1, 1>}, {transform_indices = @transform_3, window_bounds = array<i64: 1, 2, 2, 1>}]} {
    %c0 = arith.constant 0 : index
    %c0_0 = arith.constant 0 : index
    %0 = vector.load %arg3[%c0, %c0_0] : memref<1x1xf32, #tpu.memory_space<vmem>>, vector<1x1xf32>
    %1 = vector.shape_cast %0 : vector<1x1xf32> to vector<1x1xf32>
    %2 = vector.broadcast %1 : vector<1x1xf32> to vector<2x1xf32>
    %c0_i32 = arith.constant 0 : i32
    %c2_i32 = arith.constant 2 : i32
    %3 = arith.addi %c0_i32, %c2_i32 : i32
    %c1_i32 = arith.constant 1 : i32
    scf.for %arg5 = %c0_i32 to %3 step %c1_i32  : i32 {
      %c0_i32_2 = arith.constant 0 : i32
      %4 = arith.addi %arg5, %c0_i32_2 : i32
      %c0_3 = arith.constant 0 : index
      %5 = arith.index_cast %4 : i32 to index
      %c0_4 = arith.constant 0 : index
      %c0_5 = arith.constant 0 : index
      %6 = vector.load %arg1[%c0_3, %5, %c0_4, %c0_5] : memref<1x5x5x64xbf16, #tpu.memory_space<vmem>>, vector<1x1x5x64xbf16>
      %7 = vector.shape_cast %6 : vector<1x1x5x64xbf16> to vector<1x5x64xbf16>
      %8 = vector.shape_cast %7 : vector<1x5x64xbf16> to vector<5x64xbf16>
      %9 = vector.extract_strided_slice %8 {offsets = [0, 0], sizes = [2, 64], strides = [1, 1]} : vector<5x64xbf16> to vector<2x64xbf16>
      %c0_6 = arith.constant 0 : index
      %c0_7 = arith.constant 0 : index
      %c0_8 = arith.constant 0 : index
      %10 = vector.load %arg2[%c0_6, %c0_7, %c0_8] : memref<16x64x1xbf16, #tpu.memory_space<vmem>>, vector<1x64x1xbf16>
      %11 = vector.shape_cast %10 : vector<1x64x1xbf16> to vector<64x1xbf16>
      %cst = arith.constant dense<0.000000e+00> : vector<2x1xf32>
      %12 = tpu.matmul %9, %11, %cst {dimension_numbers = #tpu.dot_dimension_numbers<[1], [0], [0], [1], [0, 0, 1, 1], [], []>} : vector<2x64xbf16>, vector<64x1xbf16>, vector<2x1xf32> -> vector<2x1xf32>
      %13 = arith.addf %2, %12 : vector<2x1xf32>
      %14 = vector.extract_strided_slice %8 {offsets = [1, 0], sizes = [2, 64], strides = [1, 1]} : vector<5x64xbf16> to vector<2x64xbf16>
      %c1 = arith.constant 1 : index
      %c0_9 = arith.constant 0 : index
      %c0_10 = arith.constant 0 : index
      %15 = vector.load %arg2[%c1, %c0_9, %c0_10] : memref<16x64x1xbf16, #tpu.memory_space<vmem>>, vector<1x64x1xbf16>
      %16 = vector.shape_cast %15 : vector<1x64x1xbf16> to vector<64x1xbf16>
      %cst_11 = arith.constant dense<0.000000e+00> : vector<2x1xf32>
      %17 = tpu.matmul %14, %16, %cst_11 {dimension_numbers = #tpu.dot_dimension_numbers<[1], [0], [0], [1], [0, 0, 1, 1], [], []>} : vector<2x64xbf16>, vector<64x1xbf16>, vector<2x1xf32> -> vector<2x1xf32>
      %18 = arith.addf %13, %17 : vector<2x1xf32>
      %19 = vector.extract_strided_slice %8 {offsets = [2, 0], sizes = [2, 64], strides = [1, 1]} : vector<5x64xbf16> to vector<2x64xbf16>
      %c2 = arith.constant 2 : index
      %c0_12 = arith.constant 0 : index
      %c0_13 = arith.constant 0 : index
      %20 = vector.load %arg2[%c2, %c0_12, %c0_13] : memref<16x64x1xbf16, #tpu.memory_space<vmem>>, vector<1x64x1xbf16>
      %21 = vector.shape_cast %20 : vector<1x64x1xbf16> to vector<64x1xbf16>
      %cst_14 = arith.constant dense<0.000000e+00> : vector<2x1xf32>
      %22 = tpu.matmul %19, %21, %cst_14 {dimension_numbers = #tpu.dot_dimension_numbers<[1], [0], [0], [1], [0, 0, 1, 1], [], []>} : vector<2x64xbf16>, vector<64x1xbf16>, vector<2x1xf32> -> vector<2x1xf32>
      %23 = arith.addf %18, %22 : vector<2x1xf32>
      %24 = vector.extract_strided_slice %8 {offsets = [3, 0], sizes = [2, 64], strides = [1, 1]} : vector<5x64xbf16> to vector<2x64xbf16>
      %c3 = arith.constant 3 : index
      %c0_15 = arith.constant 0 : index
      %c0_16 = arith.constant 0 : index
      %25 = vector.load %arg2[%c3, %c0_15, %c0_16] : memref<16x64x1xbf16, #tpu.memory_space<vmem>>, vector<1x64x1xbf16>
      %26 = vector.shape_cast %25 : vector<1x64x1xbf16> to vector<64x1xbf16>
      %cst_17 = arith.constant dense<0.000000e+00> : vector<2x1xf32>
      %27 = tpu.matmul %24, %26, %cst_17 {dimension_numbers = #tpu.dot_dimension_numbers<[1], [0], [0], [1], [0, 0, 1, 1], [], []>} : vector<2x64xbf16>, vector<64x1xbf16>, vector<2x1xf32> -> vector<2x1xf32>
      %28 = arith.addf %23, %27 : vector<2x1xf32>
      %c1_i32_18 = arith.constant 1 : i32
      %29 = arith.addi %arg5, %c1_i32_18 : i32
      %c0_19 = arith.constant 0 : index
      %30 = arith.index_cast %29 : i32 to index
      %c0_20 = arith.constant 0 : index
      %c0_21 = arith.constant 0 : index
      %31 = vector.load %arg1[%c0_19, %30, %c0_20, %c0_21] : memref<1x5x5x64xbf16, #tpu.memory_space<vmem>>, vector<1x1x5x64xbf16>
      %32 = vector.shape_cast %31 : vector<1x1x5x64xbf16> to vector<1x5x64xbf16>
      %33 = vector.shape_cast %32 : vector<1x5x64xbf16> to vector<5x64xbf16>
      %34 = vector.extract_strided_slice %33 {offsets = [0, 0], sizes = [2, 64], strides = [1, 1]} : vector<5x64xbf16> to vector<2x64xbf16>
      %c4 = arith.constant 4 : index
      %c0_22 = arith.constant 0 : index
      %c0_23 = arith.constant 0 : index
      %35 = vector.load %arg2[%c4, %c0_22, %c0_23] : memref<16x64x1xbf16, #tpu.memory_space<vmem>>, vector<1x64x1xbf16>
      %36 = vector.shape_cast %35 : vector<1x64x1xbf16> to vector<64x1xbf16>
      %cst_24 = arith.constant dense<0.000000e+00> : vector<2x1xf32>
      %37 = tpu.matmul %34, %36, %cst_24 {dimension_numbers = #tpu.dot_dimension_numbers<[1], [0], [0], [1], [0, 0, 1, 1], [], []>} : vector<2x64xbf16>, vector<64x1xbf16>, vector<2x1xf32> -> vector<2x1xf32>
      %38 = arith.addf %28, %37 : vector<2x1xf32>
      %39 = vector.extract_strided_slice %33 {offsets = [1, 0], sizes = [2, 64], strides = [1, 1]} : vector<5x64xbf16> to vector<2x64xbf16>
      %c5 = arith.constant 5 : index
      %c0_25 = arith.constant 0 : index
      %c0_26 = arith.constant 0 : index
      %40 = vector.load %arg2[%c5, %c0_25, %c0_26] : memref<16x64x1xbf16, #tpu.memory_space<vmem>>, vector<1x64x1xbf16>
      %41 = vector.shape_cast %40 : vector<1x64x1xbf16> to vector<64x1xbf16>
      %cst_27 = arith.constant dense<0.000000e+00> : vector<2x1xf32>
      %42 = tpu.matmul %39, %41, %cst_27 {dimension_numbers = #tpu.dot_dimension_numbers<[1], [0], [0], [1], [0, 0, 1, 1], [], []>} : vector<2x64xbf16>, vector<64x1xbf16>, vector<2x1xf32> -> vector<2x1xf32>
      %43 = arith.addf %38, %42 : vector<2x1xf32>
      %44 = vector.extract_strided_slice %33 {offsets = [2, 0], sizes = [2, 64], strides = [1, 1]} : vector<5x64xbf16> to vector<2x64xbf16>
      %c6 = arith.constant 6 : index
      %c0_28 = arith.constant 0 : index
      %c0_29 = arith.constant 0 : index
      %45 = vector.load %arg2[%c6, %c0_28, %c0_29] : memref<16x64x1xbf16, #tpu.memory_space<vmem>>, vector<1x64x1xbf16>
      %46 = vector.shape_cast %45 : vector<1x64x1xbf16> to vector<64x1xbf16>
      %cst_30 = arith.constant dense<0.000000e+00> : vector<2x1xf32>
      %47 = tpu.matmul %44, %46, %cst_30 {dimension_numbers = #tpu.dot_dimension_numbers<[1], [0], [0], [1], [0, 0, 1, 1], [], []>} : vector<2x64xbf16>, vector<64x1xbf16>, vector<2x1xf32> -> vector<2x1xf32>
      %48 = arith.addf %43, %47 : vector<2x1xf32>
      %49 = vector.extract_strided_slice %33 {offsets = [3, 0], sizes = [2, 64], strides = [1, 1]} : vector<5x64xbf16> to vector<2x64xbf16>
      %c7 = arith.constant 7 : index
      %c0_31 = arith.constant 0 : index
      %c0_32 = arith.constant 0 : index
      %50 = vector.load %arg2[%c7, %c0_31, %c0_32] : memref<16x64x1xbf16, #tpu.memory_space<vmem>>, vector<1x64x1xbf16>
      %51 = vector.shape_cast %50 : vector<1x64x1xbf16> to vector<64x1xbf16>
      %cst_33 = arith.constant dense<0.000000e+00> : vector<2x1xf32>
      %52 = tpu.matmul %49, %51, %cst_33 {dimension_numbers = #tpu.dot_dimension_numbers<[1], [0], [0], [1], [0, 0, 1, 1], [], []>} : vector<2x64xbf16>, vector<64x1xbf16>, vector<2x1xf32> -> vector<2x1xf32>
      %53 = arith.addf %48, %52 : vector<2x1xf32>
      %c2_i32_34 = arith.constant 2 : i32
      %54 = arith.addi %arg5, %c2_i32_34 : i32
      %c0_35 = arith.constant 0 : index
      %55 = arith.index_cast %54 : i32 to index
      %c0_36 = arith.constant 0 : index
      %c0_37 = arith.constant 0 : index
      %56 = vector.load %arg1[%c0_35, %55, %c0_36, %c0_37] : memref<1x5x5x64xbf16, #tpu.memory_space<vmem>>, vector<1x1x5x64xbf16>
      %57 = vector.shape_cast %56 : vector<1x1x5x64xbf16> to vector<1x5x64xbf16>
      %58 = vector.shape_cast %57 : vector<1x5x64xbf16> to vector<5x64xbf16>
      %59 = vector.extract_strided_slice %58 {offsets = [0, 0], sizes = [2, 64], strides = [1, 1]} : vector<5x64xbf16> to vector<2x64xbf16>
      %c8 = arith.constant 8 : index
      %c0_38 = arith.constant 0 : index
      %c0_39 = arith.constant 0 : index
      %60 = vector.load %arg2[%c8, %c0_38, %c0_39] : memref<16x64x1xbf16, #tpu.memory_space<vmem>>, vector<1x64x1xbf16>
      %61 = vector.shape_cast %60 : vector<1x64x1xbf16> to vector<64x1xbf16>
      %cst_40 = arith.constant dense<0.000000e+00> : vector<2x1xf32>
      %62 = tpu.matmul %59, %61, %cst_40 {dimension_numbers = #tpu.dot_dimension_numbers<[1], [0], [0], [1], [0, 0, 1, 1], [], []>} : vector<2x64xbf16>, vector<64x1xbf16>, vector<2x1xf32> -> vector<2x1xf32>
      %63 = arith.addf %53, %62 : vector<2x1xf32>
      %64 = vector.extract_strided_slice %58 {offsets = [1, 0], sizes = [2, 64], strides = [1, 1]} : vector<5x64xbf16> to vector<2x64xbf16>
      %c9 = arith.constant 9 : index
      %c0_41 = arith.constant 0 : index
      %c0_42 = arith.constant 0 : index
      %65 = vector.load %arg2[%c9, %c0_41, %c0_42] : memref<16x64x1xbf16, #tpu.memory_space<vmem>>, vector<1x64x1xbf16>
      %66 = vector.shape_cast %65 : vector<1x64x1xbf16> to vector<64x1xbf16>
      %cst_43 = arith.constant dense<0.000000e+00> : vector<2x1xf32>
      %67 = tpu.matmul %64, %66, %cst_43 {dimension_numbers = #tpu.dot_dimension_numbers<[1], [0], [0], [1], [0, 0, 1, 1], [], []>} : vector<2x64xbf16>, vector<64x1xbf16>, vector<2x1xf32> -> vector<2x1xf32>
      %68 = arith.addf %63, %67 : vector<2x1xf32>
      %69 = vector.extract_strided_slice %58 {offsets = [2, 0], sizes = [2, 64], strides = [1, 1]} : vector<5x64xbf16> to vector<2x64xbf16>
      %c10 = arith.constant 10 : index
      %c0_44 = arith.constant 0 : index
      %c0_45 = arith.constant 0 : index
      %70 = vector.load %arg2[%c10, %c0_44, %c0_45] : memref<16x64x1xbf16, #tpu.memory_space<vmem>>, vector<1x64x1xbf16>
      %71 = vector.shape_cast %70 : vector<1x64x1xbf16> to vector<64x1xbf16>
      %cst_46 = arith.constant dense<0.000000e+00> : vector<2x1xf32>
      %72 = tpu.matmul %69, %71, %cst_46 {dimension_numbers = #tpu.dot_dimension_numbers<[1], [0], [0], [1], [0, 0, 1, 1], [], []>} : vector<2x64xbf16>, vector<64x1xbf16>, vector<2x1xf32> -> vector<2x1xf32>
      %73 = arith.addf %68, %72 : vector<2x1xf32>
      %74 = vector.extract_strided_slice %58 {offsets = [3, 0], sizes = [2, 64], strides = [1, 1]} : vector<5x64xbf16> to vector<2x64xbf16>
      %c11 = arith.constant 11 : index
      %c0_47 = arith.constant 0 : index
      %c0_48 = arith.constant 0 : index
      %75 = vector.load %arg2[%c11, %c0_47, %c0_48] : memref<16x64x1xbf16, #tpu.memory_space<vmem>>, vector<1x64x1xbf16>
      %76 = vector.shape_cast %75 : vector<1x64x1xbf16> to vector<64x1xbf16>
      %cst_49 = arith.constant dense<0.000000e+00> : vector<2x1xf32>
      %77 = tpu.matmul %74, %76, %cst_49 {dimension_numbers = #tpu.dot_dimension_numbers<[1], [0], [0], [1], [0, 0, 1, 1], [], []>} : vector<2x64xbf16>, vector<64x1xbf16>, vector<2x1xf32> -> vector<2x1xf32>
      %78 = arith.addf %73, %77 : vector<2x1xf32>
      %c3_i32 = arith.constant 3 : i32
      %79 = arith.addi %arg5, %c3_i32 : i32
      %c0_50 = arith.constant 0 : index
      %80 = arith.index_cast %79 : i32 to index
      %c0_51 = arith.constant 0 : index
      %c0_52 = arith.constant 0 : index
      %81 = vector.load %arg1[%c0_50, %80, %c0_51, %c0_52] : memref<1x5x5x64xbf16, #tpu.memory_space<vmem>>, vector<1x1x5x64xbf16>
      %82 = vector.shape_cast %81 : vector<1x1x5x64xbf16> to vector<1x5x64xbf16>
      %83 = vector.shape_cast %82 : vector<1x5x64xbf16> to vector<5x64xbf16>
      %84 = vector.extract_strided_slice %83 {offsets = [0, 0], sizes = [2, 64], strides = [1, 1]} : vector<5x64xbf16> to vector<2x64xbf16>
      %c12 = arith.constant 12 : index
      %c0_53 = arith.constant 0 : index
      %c0_54 = arith.constant 0 : index
      %85 = vector.load %arg2[%c12, %c0_53, %c0_54] : memref<16x64x1xbf16, #tpu.memory_space<vmem>>, vector<1x64x1xbf16>
      %86 = vector.shape_cast %85 : vector<1x64x1xbf16> to vector<64x1xbf16>
      %cst_55 = arith.constant dense<0.000000e+00> : vector<2x1xf32>
      %87 = tpu.matmul %84, %86, %cst_55 {dimension_numbers = #tpu.dot_dimension_numbers<[1], [0], [0], [1], [0, 0, 1, 1], [], []>} : vector<2x64xbf16>, vector<64x1xbf16>, vector<2x1xf32> -> vector<2x1xf32>
      %88 = arith.addf %78, %87 : vector<2x1xf32>
      %89 = vector.extract_strided_slice %83 {offsets = [1, 0], sizes = [2, 64], strides = [1, 1]} : vector<5x64xbf16> to vector<2x64xbf16>
      %c13 = arith.constant 13 : index
      %c0_56 = arith.constant 0 : index
      %c0_57 = arith.constant 0 : index
      %90 = vector.load %arg2[%c13, %c0_56, %c0_57] : memref<16x64x1xbf16, #tpu.memory_space<vmem>>, vector<1x64x1xbf16>
      %91 = vector.shape_cast %90 : vector<1x64x1xbf16> to vector<64x1xbf16>
      %cst_58 = arith.constant dense<0.000000e+00> : vector<2x1xf32>
      %92 = tpu.matmul %89, %91, %cst_58 {dimension_numbers = #tpu.dot_dimension_numbers<[1], [0], [0], [1], [0, 0, 1, 1], [], []>} : vector<2x64xbf16>, vector<64x1xbf16>, vector<2x1xf32> -> vector<2x1xf32>
      %93 = arith.addf %88, %92 : vector<2x1xf32>
      %94 = vector.extract_strided_slice %83 {offsets = [2, 0], sizes = [2, 64], strides = [1, 1]} : vector<5x64xbf16> to vector<2x64xbf16>
      %c14 = arith.constant 14 : index
      %c0_59 = arith.constant 0 : index
      %c0_60 = arith.constant 0 : index
      %95 = vector.load %arg2[%c14, %c0_59, %c0_60] : memref<16x64x1xbf16, #tpu.memory_space<vmem>>, vector<1x64x1xbf16>
      %96 = vector.shape_cast %95 : vector<1x64x1xbf16> to vector<64x1xbf16>
      %cst_61 = arith.constant dense<0.000000e+00> : vector<2x1xf32>
      %97 = tpu.matmul %94, %96, %cst_61 {dimension_numbers = #tpu.dot_dimension_numbers<[1], [0], [0], [1], [0, 0, 1, 1], [], []>} : vector<2x64xbf16>, vector<64x1xbf16>, vector<2x1xf32> -> vector<2x1xf32>
      %98 = arith.addf %93, %97 : vector<2x1xf32>
      %99 = vector.extract_strided_slice %83 {offsets = [3, 0], sizes = [2, 64], strides = [1, 1]} : vector<5x64xbf16> to vector<2x64xbf16>
      %c15 = arith.constant 15 : index
      %c0_62 = arith.constant 0 : index
      %c0_63 = arith.constant 0 : index
      %100 = vector.load %arg2[%c15, %c0_62, %c0_63] : memref<16x64x1xbf16, #tpu.memory_space<vmem>>, vector<1x64x1xbf16>
      %101 = vector.shape_cast %100 : vector<1x64x1xbf16> to vector<64x1xbf16>
      %cst_64 = arith.constant dense<0.000000e+00> : vector<2x1xf32>
      %102 = tpu.matmul %99, %101, %cst_64 {dimension_numbers = #tpu.dot_dimension_numbers<[1], [0], [0], [1], [0, 0, 1, 1], [], []>} : vector<2x64xbf16>, vector<64x1xbf16>, vector<2x1xf32> -> vector<2x1xf32>
      %103 = arith.addf %98, %102 : vector<2x1xf32>
      %cst_65 = arith.constant 0.000000e+00 : f32
      %104 = vector.broadcast %cst_65 : f32 to vector<2x1xf32>
      %105 = arith.subf %104, %103 : vector<2x1xf32>
      %106 = math.exp %105 : vector<2x1xf32>
      %cst_66 = arith.constant 1.000000e+00 : f32
      %107 = vector.broadcast %cst_66 : f32 to vector<2x1xf32>
      %108 = arith.addf %107, %106 : vector<2x1xf32>
      %cst_67 = arith.constant 1.000000e+00 : f32
      %109 = vector.broadcast %cst_67 : f32 to vector<2x1xf32>
      %110 = arith.divf %109, %108 : vector<2x1xf32>
      %111 = vector.shape_cast %110 : vector<2x1xf32> to vector<1x2x1xf32>
      %c0_68 = arith.constant 0 : index
      %112 = arith.index_cast %arg5 : i32 to index
      %c0_69 = arith.constant 0 : index
      %c0_70 = arith.constant 0 : index
      %113 = vector.load %arg4[%c0_68, %112, %c0_69, %c0_70] : memref<1x2x2x1xf32, #tpu.memory_space<vmem>>, vector<1x1x2x1xf32>
      %114 = vector.shape_cast %113 : vector<1x1x2x1xf32> to vector<1x2x1xf32>
      %115 = vector.shape_cast %111 : vector<1x2x1xf32> to vector<1x1x2x1xf32>
      tpu.vector_store %arg4[%c0_68, %112, %c0_69, %c0_70], %115 {strides = array<i32>} : memref<1x2x2x1xf32, #tpu.memory_space<vmem>>, vector<1x1x2x1xf32>,
    }
    %c2_i32_1 = arith.constant 2 : i32
    return
  }
  func.func @transform_0(%arg0: i32) -> (i32, i32, i32, i32) {
    %c0_i32 = arith.constant 0 : i32
    %c0_i32_0 = arith.constant 0 : i32
    %c0_i32_1 = arith.constant 0 : i32
    %c0_i32_2 = arith.constant 0 : i32
    return %arg0, %c0_i32, %c0_i32_0, %c0_i32_1 : i32, i32, i32, i32
  }
  func.func @transform_1(%arg0: i32) -> (i32, i32, i32) {
    %c0_i32 = arith.constant 0 : i32
    %c0_i32_0 = arith.constant 0 : i32
    %c0_i32_1 = arith.constant 0 : i32
    %c0_i32_2 = arith.constant 0 : i32
    return %c0_i32, %c0_i32_0, %c0_i32_1 : i32, i32, i32
  }
  func.func @transform_2(%arg0: i32) -> (i32, i32) {
    %c0_i32 = arith.constant 0 : i32
    %c0_i32_0 = arith.constant 0 : i32
    %c0_i32_1 = arith.constant 0 : i32
    return %c0_i32, %c0_i32_0 : i32, i32
  }
  func.func @transform_3(%arg0: i32) -> (i32, i32, i32, i32) {
    %c0_i32 = arith.constant 0 : i32
    %c0_i32_0 = arith.constant 0 : i32
    %c0_i32_1 = arith.constant 0 : i32
    %c0_i32_2 = arith.constant 0 : i32
    return %arg0, %c0_i32, %c0_i32_0, %c0_i32_1 : i32, i32, i32, i32
  }
}

</mosaic_0001>

<bundles_post_ra>
// kernel: d_forward.5
= control target key start
LH: loop header
LB: loop body
LE: loop exit
PB: predicated region body
PF: predicated region fallthrough
CT: control target
= control target key end

     0   :  { %s735_s12 = smov 0   ;;  %s813_s0 = inlined_call_operand.vmem [shape: bf16[2,17,17,24], index: 0, kind: input, shape index: {}]   ;;  %s814_s1 = inlined_call_operand.vmem [shape: bf16[4,24,8], index: 1, kind: input, shape index: {}]   ;;  %s815_s2 = inlined_call_operand.vmem [shape: f32[1,8], index: 2, kind: input, shape index: {}]   ;;  %s816_s3 = inlined_call_operand.vmem [shape: bf16[2,16,16,8], index: 3, kind: output, shape index: {}]  }
   0x1 LB: > { %s573_s13 = sadd.s32 4294967295, %s707_s12   ;;  %p577_p0 = scmp.ge.s32.totalorder %s707_s12, 1  ;;  %s707_s12 = sphi %s735_s12, %s13_s12  }
   0x2   : > { %p137_p1 = scmp.lt.s32.totalorder %s707_s12, 3 }
   0x4   : > { %p138_p2 = pnand %p577_p0, %p137_p1 }
   0x5   : > { %p161_p3 = scmp.lt.s32.totalorder (!%p138_p2), %s573_s13, 1  ;;  %s758_s24 = smov (!%p138_p2), 0  }
   0x6   : > { %141 = sbr.rel (%p138_p2) target bundleno = 240 (0xf0), region = 32 }
   0xb   : > { %v746_v0 = vld [vmem:[%s815_s2] ss:$0 sm:$0xff]  ;;  %s818_s13 = smov (!%p161_p3, %s573_s13), 1 }
   0xc   : > { %s666_s16 = smul.u32 204, %s818_s13  ;;  %s617_s17 = sshll.u32 %s818_s13, 7 }
   0xd   : > { %s751_s20 = scalar_lea.vmem %s816_s3, %s617_s17 }
   0xe   : > { %s756_s23 = scalar_lea.vmem %s813_s0, %s666_s16 }
   0xf LB: >> { %v685_v1 = vld [vmem:[%s814_s1 + $0x8] ss:$0 sps:$4 sm:$0xff]   ;;  %vm212_vm0 = vcmask 1043456   ;;  %v713_v2 = vmov 0.0   ;;  %v686_v3 = vld [vmem:[%s814_s1 + $0x14] ss:$0 sps:$4 sm:$0xff]   ;;  %s711_s24 = sphi %s758_s24, %s184_s24  }
  0x10   : >> { %634 = vmatprep.subr.bf16.mxu0 %v713_v2  ;;  %642 = vmatprep.subr.bf16.mxu1 %v713_v2  ;;  %v214_v4 = vsel %vm212_vm0, %v685_v1, 0  ;;  %s618_s29 = smul.u32 12, %s711_s24  ;;  %v291_v5 = vsel %vm212_vm0, %v686_v3, 0  ;;  %v687_v6 = vld [vmem:[%s814_s1] sm:$0xff]   ;;  %vm714_vm1 = vmmov 0   ;;  %v689_v7 = vld [vmem:[%s814_s1 + $0xc] sm:$0xff]  }
  0x11   : >> { %635 = vmatpush3.bf16.msra.mxu0 %v214_v4  ;;  %638 = vmatprep.mubr.msk.bf16.mxu0 %vm714_vm1, %v713_v2  ;;  %v690_v8 = vld [vmem:[%s814_s1 + $0x20] ss:$0 sps:$4 sm:$0xff]   ;;  %vm208_vm2 = vcmask 195584   ;;  %vm266_vm3 = vsmask.f32 7424  ;;  %v693_v20 = vld [vmem:[%s814_s1 + $0x18] sm:$0xff]  }
  0x12   : >> { %636 = vmatprep.subr.bf16.mxu0 %v713_v2  ;;  %643 = vmatpush3.bf16.msra.mxu1 %v291_v5  ;;  %s187_s5 = scalar_lea.vmem %s756_s23, %s618_s29  ;;  %v365_v13 = vsel %vm212_vm0, %v690_v8, 0  ;;  %v692_v15 = vld [vmem:[%s814_s1 + $0x2c] ss:$0 sps:$4 sm:$0xff]   ;;  %v695_v28 = vld [vmem:[%s814_s1 + $0x24] sm:$0xff]   ;;  %s621_s17 = sshll.u32 %s711_s24, 3  ;;  %vm503_vm5 = vcmask 60416  }
  0x13   : >> { %644 = vmatprep.subr.bf16.mxu1 %v713_v2  ;;  %v688_v9 = vld [vmem:[%s187_s5] sm:$0xff]   ;;  %646 = vmatprep.mubr.msk.bf16.mxu1 %vm714_vm1, %v713_v2  ;;  %v691_v10 = vld [vmem:[%s187_s5 + $0x8] ss:$0 sps:$4 sm:$0x11]   ;;  %v694_v17 = vld [vmem:[%s187_s5 + $0xc] sm:$0xff]   ;;  %v441_v21 = vsel %vm212_vm0, %v692_v15, 0  ;;  %s502_s18 = scalar_lea.vmem %s751_s20, %s621_s17 }
  0x14   : >> { %v267_v11 = vshrl.u32 %v688_v9, 16  ;;  %v269_v12 = vshll.u32 %v688_v9, 16  ;;  %v274_v14 = vshll.u32 %v691_v10, 16  ;;  %v696_v22 = vld [vmem:[%s187_s5 + $0x14] ss:$0 sps:$4 sm:$0x11]  }
  0x15   : >> { %637 = vmatpush3.bf16.msra.mxu0 %v687_v6  ;;  %v417_v23 = vshrl.u32 %v694_v17, 16  ;;  %v419_v24 = vshll.u32 %v694_v17, 16  ;;  %v424_v27 = vshll.u32 %v696_v22, 16  ;;  %s184_s24 = sadd.s32 1, %s711_s24  }
  0x16   : >> { %645 = vmatpush3.bf16.msra.mxu1 %v689_v7  ;;  %650 = vmatprep.subr.bf16.mxu0 %v713_v2  ;;  %v271_v16 = vrot.slane %v269_v12, 1  ;;  %v276_v18 = vrot.slane %v274_v14, 1  ;;  %p181_p4 = scmp.ge.s32.totalorder %s184_s24, 16  }
  0x17   : >> { %658 = vmatprep.subr.bf16.mxu1 %v713_v2  ;;  %v421_v26 = vrot.slane %v419_v24, 1  ;;  %v426_v30 = vrot.slane %v424_v27, 1 }
  0x18   : >> { %639 = vmatmul.mubr.msk.bf16.vlgmr.msra.gmra.mxu0 %vm208_vm2, %v688_v9  ;;  %v272_v19 = vor.u32 %v271_v16, %v267_v11 }
  0x19   : >> { %651 = vmatpush3.bf16.msra.mxu0 %v365_v13  ;;  %654 = vmatprep.mubr.msk.bf16.mxu0 %vm714_vm1, %v713_v2  ;;  %v422_v29 = vor.u32 %v421_v26, %v417_v23 }
  0x1a   : >> { %652 = vmatprep.subr.bf16.mxu0 %v713_v2  ;;  %v277_v25 = vsel %vm266_vm3, %v272_v19, %v276_v18 }
  0x1b   : >> { %647 = vmatmul.mubr.msk.bf16.vlgmr.msra.gmra.mxu1 %vm208_vm2, %v277_v25  ;;  %v427_v31 = vsel %vm266_vm3, %v422_v29, %v426_v30 }
  0x1c   : >> { %659 = vmatpush3.bf16.msra.mxu1 %v441_v21  ;;  %662 = vmatprep.mubr.msk.bf16.mxu1 %vm714_vm1, %v713_v2 }
  0x1d   : >> { %653 = vmatpush3.bf16.msra.mxu0 %v693_v20  ;;  %660 = vmatprep.subr.bf16.mxu1 %v713_v2 }
  0x20   : >> { %655 = vmatmul.mubr.msk.bf16.vlgmr.msra.gmra.mxu0 %vm208_vm2, %v694_v17  ;;  %661 = vmatpush3.bf16.msra.mxu1 %v695_v28 }
  0x23   : >> { %663 = vmatmul.mubr.msk.bf16.vlgmr.msra.gmra.mxu1 %vm208_vm2, %v427_v31 }
  0xd8   : >> { %v250_v32 = vpop.f32.mrf.mxu0 }
  0xd9   : >> { %v257_v36 = vadd.f32 %v746_v0, %v250_v32 }
  0xda   : >> { %v640_v33 = vpop.f32.mrf.mxu0 }
  0xdb   : >> { %v327_v35 = vpop.f32.mrf.mxu1 }
  0xdc   : >> { %v253_v34 = vpop.f32.mrf.mxu0  ;;  %v334_v41 = vadd.f32 %v327_v35, %v257_v36 }
  0xdd   : >> { %v648_v38 = vpop.f32.mrf.mxu1  ;;  %v258_v44 = vadd.f32 %v746_v0, %v253_v34 }
  0xde   : >> { %v641_v37 = vpop.f32.mrf.mxu0 }
  0xdf   : >> { %v330_v39 = vpop.f32.mrf.mxu1 }
  0xe0   : >> { %v401_v40 = vpop.f32.mrf.mxu0  ;;  %v335_v48 = vadd.f32 %v330_v39, %v258_v44 }
  0xe1   : >> { %v649_v42 = vpop.f32.mrf.mxu1  ;;  %v408_v45 = vadd.f32 %v401_v40, %v334_v41 }
  0xe2   : >> { %v656_v43 = vpop.f32.mrf.mxu0 }
  0xe3   : >> { %v477_v47 = vpop.f32.mrf.mxu1 }
  0xe4   : >> { %v404_v46 = vpop.f32.mrf.mxu0  ;;  %v484_v49 = vadd.f32 %v477_v47, %v408_v45 }
  0xe5   : >> { %v664_v51 = vpop.f32.mrf.mxu1  ;;  %v409_v52 = vadd.f32 %v404_v46, %v335_v48 }
  0xe6   : >> { %v657_v50 = vpop.f32.mrf.mxu0  ;;  %vm486_vm4 = vcmp.gt.f32.partialorder %v484_v49, 0.0  ;;  %v488_v53 = vmul.f32 0.2, %v484_v49 }
  0xe7   : >> { %v480_v54 = vpop.f32.mrf.mxu1 }
  0xe8   : >> { %v490_v55 = vsel %vm486_vm4, %v484_v49, %v488_v53  ;;  %v485_v56 = vadd.f32 %v480_v54, %v409_v52 }
  0xe9   : >> { %v619_v57 = vpack.c.bf16 %v490_v55, %v490_v55  ;;  %v665_v58 = vpop.f32.mrf.mxu1 }
  0xea   : >> { %vm487_vm6 = vcmp.gt.f32.partialorder %v485_v56, 0.0  ;;  %v489_v59 = vmul.f32 0.2, %v485_v56 }
  0xeb   : >> { %504 = vst.msk [vmem:[%s502_s18] sm:$0xf] %vm503_vm5, %v619_v57  ;;  %183 = sbr.rel (!%p181_p4) target bundleno = 15 (0xf), region = 75 }
  0xec   : >> { %v491_v60 = vsel %vm487_vm6, %v485_v56, %v489_v59 }
  0xed   : >> { %v620_v61 = vpack.c.bf16 %v491_v60, %v491_v60 }
  0xef   : >> { %505 = vst.msk [vmem:[%s502_s18 + $0x4] sm:$0xf] %vm503_vm5, %v620_v61 }
  0xf0 PF: > { %s13_s12 = sadd.s32 1, %s707_s12  }
  0xf1   : > { %p10_p5 = scmp.ge.s32.totalorder %s13_s12, 4  }
  0xf3   :  { %12 = sbr.rel (!%p10_p5) target bundleno = 1 (0x1), region = 86 }

// kernel: d_forward.6
= control target key start
LH: loop header
LB: loop body
LE: loop exit
PB: predicated region body
PF: predicated region fallthrough
CT: control target
= control target key end

     0   :  { %s692_s12 = smov 0   ;;  %s763_s0 = inlined_call_operand.vmem [shape: bf16[2,9,9,32], index: 0, kind: input, shape index: {}]   ;;  %s764_s1 = inlined_call_operand.vmem [shape: bf16[4,32,16], index: 1, kind: input, shape index: {}]   ;;  %s765_s2 = inlined_call_operand.vmem [shape: f32[1,16], index: 2, kind: input, shape index: {}]   ;;  %s766_s3 = inlined_call_operand.vmem [shape: bf16[2,8,8,16], index: 3, kind: output, shape index: {}]  }
   0x1 LB: > { %s536_s13 = sadd.s32 4294967295, %s664_s12   ;;  %p540_p0 = scmp.ge.s32.totalorder %s664_s12, 1  ;;  %s664_s12 = sphi %s692_s12, %s13_s12  }
   0x2   : > { %p137_p1 = scmp.lt.s32.totalorder %s664_s12, 3 }
   0x4   : > { %p138_p2 = pnand %p540_p0, %p137_p1 }
   0x5   : > { %p161_p3 = scmp.lt.s32.totalorder (!%p138_p2), %s536_s13, 1  ;;  %s715_s24 = smov (!%p138_p2), 0  }
   0x6   : > { %141 = sbr.rel (%p138_p2) target bundleno = 233 (0xe9), region = 32 }
   0xb   : > { %v703_v0 = vld [vmem:[%s765_s2] ss:$0 sm:$0xff]  ;;  %s768_s13 = smov (!%p161_p3, %s536_s13), 1 }
   0xc   : > { %s625_s16 = smul.u32 72, %s768_s13  ;;  %s579_s17 = sshll.u32 %s768_s13, 5 }
   0xd   : > { %s708_s20 = scalar_lea.vmem %s766_s3, %s579_s17 }
   0xe   : > { %s713_s23 = scalar_lea.vmem %s763_s0, %s625_s16 }
   0xf LB: >> { %v644_v1 = vld [vmem:[%s764_s1 + $0x8] sm:$0xff]   ;;  %v670_v2 = vmov 0.0   ;;  %v645_v3 = vld [vmem:[%s764_s1 + $0x18] sm:$0xff]   ;;  %v646_v4 = vld [vmem:[%s764_s1] sm:$0xff]   ;;  %vm671_vm0 = vmmov 0   ;;  %s580_s4 = sshll.u32 %s668_s24, 3  ;;  %s668_s24 = sphi %s715_s24, %s184_s24  }
  0x10   : >> { %593 = vmatprep.subr.bf16.mxu0 %v670_v2  ;;  %601 = vmatprep.subr.bf16.mxu1 %v670_v2  ;;  %v647_v5 = vld [vmem:[%s764_s1 + $0x10] sm:$0xff]   ;;  %s187_s7 = scalar_lea.vmem %s713_s23, %s580_s4  ;;  %vm206_vm1 = vcmask 261120   ;;  %v649_v9 = vld [vmem:[%s764_s1 + $0x28] sm:$0xff]   ;;  %v650_v15 = vld [vmem:[%s764_s1 + $0x38] sm:$0xff]   ;;  %s576_s17 = sshll.u32 %s668_s24, 2  ;;  %vm467_vm2 = vcmask 125952  }
  0x11   : >> { %594 = vmatpush3.bf16.msra.mxu0 %v644_v1  ;;  %597 = vmatprep.mubr.msk.bf16.mxu0 %vm671_vm0, %v670_v2  ;;  %v188_v6 = vld [vmem:[%s187_s7] sm:$0xf]  ;;  %v189_v7 = vld [vmem:[%s187_s7 + $0x4] sm:$0x1]  ;;  %v559_v12 = vld [vmem:[%s187_s7 + $0x8] sm:$0xf]  ;;  %s466_s18 = scalar_lea.vmem %s708_s20, %s576_s17 }
  0x12   : >> { %602 = vmatpush3.bf16.msra.mxu1 %v645_v3  ;;  %595 = vmatprep.subr.bf16.mxu0 %v670_v2  ;;  %v554_v8 = vcombine.low %v188_v6, %v189_v7  ;;  %v560_v14 = vld [vmem:[%s187_s7 + $0xc] sm:$0x1]  ;;  %v651_v16 = vld [vmem:[%s764_s1 + $0x20] sm:$0xff]   ;;  %v652_v21 = vld [vmem:[%s764_s1 + $0x30] sm:$0xff]   ;;  %s184_s24 = sadd.s32 1, %s668_s24  }
  0x13   : >> { %603 = vmatprep.subr.bf16.mxu1 %v670_v2  ;;  %605 = vmatprep.mubr.msk.bf16.mxu1 %vm671_vm0, %v670_v2  ;;  %v572_v17 = vcombine.low %v559_v12, %v560_v14  ;;  %p181_p4 = scmp.ge.s32.totalorder %s184_s24, 8  }
  0x14   : >> { %v262_v10 = vshrl.u32 %v554_v8, 16  ;;  %v264_v11 = vshll.u32 %v554_v8, 16 }
  0x15   : >> { %596 = vmatpush3.bf16.msra.mxu0 %v646_v4  ;;  %v404_v19 = vshll.u32 %v572_v17, 16  ;;  %v402_v20 = vshrl.u32 %v572_v17, 16 }
  0x16   : >> { %604 = vmatpush3.bf16.msra.mxu1 %v647_v5  ;;  %609 = vmatprep.subr.bf16.mxu0 %v670_v2  ;;  %v266_v13 = vrot.slane %v264_v11, 1 }
  0x17   : >> { %617 = vmatprep.subr.bf16.mxu1 %v670_v2  ;;  %v406_v22 = vrot.slane %v404_v19, 1 }
  0x18   : >> { %598 = vmatmul.mubr.msk.bf16.vlgmr.msra.gmra.mxu0 %vm206_vm1, %v188_v6  ;;  %v267_v18 = vor.u32 %v266_v13, %v262_v10 }
  0x19   : >> { %610 = vmatpush3.bf16.msra.mxu0 %v649_v9  ;;  %613 = vmatprep.mubr.msk.bf16.mxu0 %vm671_vm0, %v670_v2  ;;  %v407_v23 = vor.u32 %v406_v22, %v402_v20 }
  0x1a   : >> { %611 = vmatprep.subr.bf16.mxu0 %v670_v2  ;;  %606 = vmatmul.mubr.msk.bf16.vlgmr.msra.gmra.mxu1 %vm206_vm1, %v267_v18 }
  0x1b   : >> { %618 = vmatpush3.bf16.msra.mxu1 %v650_v15  ;;  %621 = vmatprep.mubr.msk.bf16.mxu1 %vm671_vm0, %v670_v2 }
  0x1c   : >> { %619 = vmatprep.subr.bf16.mxu1 %v670_v2 }
  0x1d   : >> { %612 = vmatpush3.bf16.msra.mxu0 %v651_v16 }
  0x1f   : >> { %620 = vmatpush3.bf16.msra.mxu1 %v652_v21 }
  0x20   : >> { %614 = vmatmul.mubr.msk.bf16.vlgmr.msra.gmra.mxu0 %vm206_vm1, %v559_v12 }
  0x22   : >> { %622 = vmatmul.mubr.msk.bf16.vlgmr.msra.gmra.mxu1 %vm206_vm1, %v407_v23 }
  0xd8   : >> { %v244_v24 = vpop.f32.mrf.mxu0 }
  0xd9   : >> { %v250_v28 = vadd.f32 %v703_v0, %v244_v24 }
  0xda   : >> { %v599_v25 = vpop.f32.mrf.mxu0  ;;  %v317_v26 = vpop.f32.mrf.mxu1 }
  0xdb   : >> { %v323_v33 = vadd.f32 %v317_v26, %v250_v28 }
  0xdc   : >> { %v247_v27 = vpop.f32.mrf.mxu0  ;;  %v607_v29 = vpop.f32.mrf.mxu1 }
  0xde   : >> { %v600_v30 = vpop.f32.mrf.mxu0  ;;  %v320_v31 = vpop.f32.mrf.mxu1 }
  0xe0   : >> { %v384_v32 = vpop.f32.mrf.mxu0  ;;  %v608_v34 = vpop.f32.mrf.mxu1 }
  0xe1   : >> { %v390_v36 = vadd.f32 %v384_v32, %v323_v33 }
  0xe2   : >> { %v615_v35 = vpop.f32.mrf.mxu0  ;;  %v457_v37 = vpop.f32.mrf.mxu1 }
  0xe3   : >> { %v463_v39 = vadd.f32 %v457_v37, %v390_v36 }
  0xe4   : >> { %v387_v38 = vpop.f32.mrf.mxu0  ;;  %v623_v40 = vpop.f32.mrf.mxu1  ;;  %183 = sbr.rel (!%p181_p4) target bundleno = 15 (0xf), region = 75 }
  0xe5   : >> { %v464_v42 = vpack.c.bf16 %v463_v39, %v463_v39 }
  0xe6   : >> { %v616_v41 = vpop.f32.mrf.mxu0  ;;  %v460_v43 = vpop.f32.mrf.mxu1 }
  0xe7   : >> { %468 = vst.msk [vmem:[%s466_s18] sm:$0xf] %vm467_vm2, %v464_v42 }
  0xe8   : >> { %v624_v44 = vpop.f32.mrf.mxu1 }
  0xe9 PF: > { %s13_s12 = sadd.s32 1, %s664_s12  }
  0xea   : > { %p10_p5 = scmp.ge.s32.totalorder %s13_s12, 4  }
  0xec   :  { %12 = sbr.rel (!%p10_p5) target bundleno = 1 (0x1), region = 86 }

// kernel: d_forward.7
= control target key start
LH: loop header
LB: loop body
LE: loop exit
PB: predicated region body
PF: predicated region fallthrough
CT: control target
= control target key end

     0   :  { %s797_s12 = smov 0   ;;  %s912_s0 = inlined_call_operand.vmem [shape: bf16[2,5,5,64], index: 0, kind: input, shape index: {}]   ;;  %s913_s1 = inlined_call_operand.vmem [shape: bf16[4,64,32], index: 1, kind: input, shape index: {}]   ;;  %s914_s2 = inlined_call_operand.vmem [shape: f32[1,32], index: 2, kind: input, shape index: {}]   ;;  %s915_s3 = inlined_call_operand.vmem [shape: bf16[2,4,4,32], index: 3, kind: output, shape index: {}]  }
   0x1 LB: > { %s592_s13 = sadd.s32 4294967295, %s769_s12   ;;  %p596_p0 = scmp.ge.s32.totalorder %s769_s12, 1  ;;  %s769_s12 = sphi %s797_s12, %s13_s12  }
   0x2   : > { %p137_p1 = scmp.lt.s32.totalorder %s769_s12, 3 }
   0x4   : > { %p138_p2 = pnand %p596_p0, %p137_p1 }
   0x5   : > { %p161_p3 = scmp.lt.s32.totalorder (!%p138_p2), %s592_s13, 1  ;;  %s820_s24 = smov (!%p138_p2), 0  }
   0x6   : > { %141 = sbr.rel (%p138_p2) target bundleno = 248 (0xf8), region = 32 }
   0xb   : > { %v808_v0 = vld [vmem:[%s914_s2] ss:$0 sm:$0xff]  ;;  %s917_s13 = smov (!%p161_p3, %s592_s13), 1 }
   0xc   : > { %s722_s16 = smul.u32 20, %s917_s13  ;;  %s653_s17 = sshll.u32 %s917_s13, 3 }
   0xd   : > { %s813_s20 = scalar_lea.vmem %s915_s3, %s653_s17 }
   0xe   : > { %s818_s23 = scalar_lea.vmem %s912_s0, %s722_s16 }
   0xf LB: >> { %v741_v1 = vld [vmem:[%s913_s1 + $0x18] sm:$0xff]   ;;  %v775_v2 = vmov 0.0   ;;  %v743_v4 = vld [vmem:[%s913_s1 + $0x10] sm:$0xff]   ;;  %vm776_vm0 = vmmov 0   ;;  %s601_s4 = sshll.u32 %s773_s24, 2  ;;  %v745_v6 = vld [vmem:[%s913_s1 + $0x8] sm:$0xff]   ;;  %s773_s24 = sphi %s820_s24, %s184_s24  }
  0x10   : >> { %674 = vmatprep.subr.bf16.mxu0 %v775_v2  ;;  %686 = vmatprep.subr.bf16.mxu1 %v775_v2  ;;  %v742_v3 = vld [vmem:[%s913_s1 + $0x38] sm:$0xff]   ;;  %v744_v5 = vld [vmem:[%s913_s1 + $0x30] sm:$0xff]   ;;  %s186_s7 = scalar_lea.vmem %s818_s23, %s601_s4  ;;  %v746_v7 = vld [vmem:[%s913_s1 + $0x28] sm:$0xff]   ;;  %vm220_vm1 = vcmask 523264   ;;  %s650_s9 = sshll.u32 %s773_s24, 1  ;;  %vm523_vm2 = vcmask 254976  }
  0x11   : >> { %675 = vmatpush3.bf16.msra.mxu0 %v741_v1  ;;  %682 = vmatprep.mubr.msk.bf16.mxu0 %vm776_vm0, %v775_v2  ;;  %v187_v8 = vld [vmem:[%s186_s7] sm:$0x7]  ;;  %v622_v15 = vld [vmem:[%s186_s7 + $0x4] sm:$0x7]  ;;  %v751_v16 = vld [vmem:[%s913_s1 + $0x58] sm:$0xff]   ;;  %s522_s10 = scalar_lea.vmem %s813_s20, %s650_s9  ;;  %s184_s24 = sadd.s32 1, %s773_s24  }
  0x12   : >> { %687 = vmatpush3.bf16.msra.mxu1 %v742_v3  ;;  %676 = vmatprep.subr.bf16.mxu0 %v775_v2  ;;  %v615_v9 = vcombine.low %v187_v8, %v187_v8  ;;  %v747_v10 = vld [vmem:[%s913_s1] sm:$0xff]   ;;  %v752_v18 = vld [vmem:[%s913_s1 + $0x78] sm:$0xff]   ;;  %v644_v19 = vcombine.low %v622_v15, %v622_v15  ;;  %v753_v20 = vld [vmem:[%s913_s1 + $0x50] sm:$0xff]   ;;  %p181_p4 = scmp.ge.s32.totalorder %s184_s24, 4  }
  0x13   : >> { %688 = vmatprep.subr.bf16.mxu1 %v775_v2  ;;  %694 = vmatprep.mubr.msk.bf16.mxu1 %vm776_vm0, %v775_v2  ;;  %v748_v11 = vld [vmem:[%s913_s1 + $0x20] sm:$0xff]   ;;  %v754_v21 = vld [vmem:[%s913_s1 + $0x70] sm:$0xff]   ;;  %v755_v23 = vld [vmem:[%s913_s1 + $0x48] sm:$0xff]  }
  0x14   : >> { %v278_v12 = vshrl.u32 %v615_v9, 16  ;;  %v280_v13 = vshll.u32 %v615_v9, 16  ;;  %v448_v22 = vshll.u32 %v644_v19, 16  ;;  %v756_v24 = vld [vmem:[%s913_s1 + $0x68] sm:$0xff]   ;;  %v446_v25 = vshrl.u32 %v644_v19, 16  ;;  %v757_v27 = vld [vmem:[%s913_s1 + $0x40] sm:$0xff]  }
  0x15   : >> { %677 = vmatpush3.bf16.msra.mxu0 %v743_v4  ;;  %v758_v28 = vld [vmem:[%s913_s1 + $0x60] sm:$0xff]  }
  0x16   : >> { %689 = vmatpush3.bf16.msra.mxu1 %v744_v5  ;;  %678 = vmatprep.subr.bf16.mxu0 %v775_v2  ;;  %v282_v14 = vrot.slane %v280_v13, 1  ;;  %v450_v26 = vrot.slane %v448_v22, 1 }
  0x17   : >> { %690 = vmatprep.subr.bf16.mxu1 %v775_v2 }
  0x18   : >> { %v283_v17 = vor.u32 %v282_v14, %v278_v12  ;;  %v451_v29 = vor.u32 %v450_v26, %v446_v25 }
  0x19   : >> { %679 = vmatpush3.bf16.msra.mxu0 %v745_v6 }
  0x1a   : >> { %691 = vmatpush3.bf16.msra.mxu1 %v746_v7  ;;  %680 = vmatprep.subr.bf16.mxu0 %v775_v2 }
  0x1b   : >> { %692 = vmatprep.subr.bf16.mxu1 %v775_v2 }
  0x1d   : >> { %681 = vmatpush3.bf16.msra.mxu0 %v747_v10 }
  0x1e   : >> { %693 = vmatpush3.bf16.msra.mxu1 %v748_v11  ;;  %698 = vmatprep.subr.bf16.mxu0 %v775_v2 }
  0x1f   : >> { %710 = vmatprep.subr.bf16.mxu1 %v775_v2 }
  0x20   : >> { %683 = vmatmul.mubr.msk.bf16.vlgmr.msra.gmra.mxu0 %vm220_vm1, %v187_v8 }
  0x21   : >> { %695 = vmatmul.mubr.msk.bf16.vlgmr.msra.gmra.mxu1 %vm220_vm1, %v283_v17  ;;  %699 = vmatpush3.bf16.msra.mxu0 %v751_v16 }
  0x22   : >> { %711 = vmatpush3.bf16.msra.mxu1 %v752_v18  ;;  %700 = vmatprep.subr.bf16.mxu0 %v775_v2 }
  0x23   : >> { %712 = vmatprep.subr.bf16.mxu1 %v775_v2  ;;  %706 = vmatprep.mubr.msk.bf16.mxu0 %vm776_vm0, %v775_v2 }
  0x24   : >> { %718 = vmatprep.mubr.msk.bf16.mxu1 %vm776_vm0, %v775_v2 }
  0x25   : >> { %701 = vmatpush3.bf16.msra.mxu0 %v753_v20 }
  0x26   : >> { %713 = vmatpush3.bf16.msra.mxu1 %v754_v21  ;;  %702 = vmatprep.subr.bf16.mxu0 %v775_v2 }
  0x27   : >> { %714 = vmatprep.subr.bf16.mxu1 %v775_v2 }
  0x29   : >> { %703 = vmatpush3.bf16.msra.mxu0 %v755_v23 }
  0x2a   : >> { %715 = vmatpush3.bf16.msra.mxu1 %v756_v24  ;;  %704 = vmatprep.subr.bf16.mxu0 %v775_v2 }
  0x2b   : >> { %716 = vmatprep.subr.bf16.mxu1 %v775_v2 }
  0x2d   : >> { %705 = vmatpush3.bf16.msra.mxu0 %v757_v27 }
  0x2e   : >> { %717 = vmatpush3.bf16.msra.mxu1 %v758_v28 }
  0x30   : >> { %707 = vmatmul.mubr.msk.bf16.vlgmr.msra.gmra.mxu0 %vm220_vm1, %v622_v15 }
  0x31   : >> { %719 = vmatmul.mubr.msk.bf16.vlgmr.msra.gmra.mxu1 %vm220_vm1, %v451_v29 }
  0xe0   : >> { %v258_v30 = vpop.f32.mrf.mxu0 }
  0xe1   : >> { %v345_v31 = vpop.f32.mrf.mxu1  ;;  %v264_v38 = vadd.f32 %v808_v0, %v258_v30 }
  0xe2   : >> { %v684_v32 = vpop.f32.mrf.mxu0 }
  0xe3   : >> { %v696_v33 = vpop.f32.mrf.mxu1  ;;  %v351_v39 = vadd.f32 %v345_v31, %v264_v38 }
  0xe4   : >> { %v261_v34 = vpop.f32.mrf.mxu0 }
  0xe5   : >> { %v348_v35 = vpop.f32.mrf.mxu1 }
  0xe6   : >> { %v685_v36 = vpop.f32.mrf.mxu0 }
  0xe7   : >> { %v697_v37 = vpop.f32.mrf.mxu1 }
  0xf0   : >> { %v426_v40 = vpop.f32.mrf.mxu0 }
  0xf1   : >> { %v432_v41 = vadd.f32 %v426_v40, %v351_v39  ;;  %v513_v42 = vpop.f32.mrf.mxu1 }
  0xf2   : >> { %v708_v43 = vpop.f32.mrf.mxu0 }
  0xf3   : >> { %v519_v44 = vadd.f32 %v513_v42, %v432_v41  ;;  %v720_v45 = vpop.f32.mrf.mxu1  ;;  %183 = sbr.rel (!%p181_p4) target bundleno = 15 (0xf), region = 75 }
  0xf4   : >> { %v429_v46 = vpop.f32.mrf.mxu0 }
  0xf5   : >> { %v520_v47 = vpack.c.bf16 %v519_v44, %v519_v44  ;;  %v516_v48 = vpop.f32.mrf.mxu1 }
  0xf6   : >> { %v709_v49 = vpop.f32.mrf.mxu0 }
  0xf7   : >> { %524 = vst.msk [vmem:[%s522_s10] sm:$0x3] %vm523_vm2, %v520_v47  ;;  %v721_v50 = vpop.f32.mrf.mxu1 }
  0xf8 PF: > { %s13_s12 = sadd.s32 1, %s769_s12  }
  0xf9   : > { %p10_p5 = scmp.ge.s32.totalorder %s13_s12, 4  }
  0xfb   :  { %12 = sbr.rel (!%p10_p5) target bundleno = 1 (0x1), region = 86 }

// kernel: d_forward.8
= control target key start
LH: loop header
LB: loop body
LE: loop exit
PB: predicated region body
PF: predicated region fallthrough
CT: control target
= control target key end

     0   :  { %s1714_s12 = smov 0   ;;  %s1935_s0 = inlined_call_operand.vmem [shape: bf16[2,6,6,32], index: 0, kind: input, shape index: {}]   ;;  %s1936_s1 = inlined_call_operand.vmem [shape: bf16[16,32,64], index: 1, kind: input, shape index: {}]   ;;  %s1937_s2 = inlined_call_operand.vmem [shape: f32[1,64], index: 2, kind: input, shape index: {}]   ;;  %s1938_s3 = inlined_call_operand.vmem [shape: bf16[2,3,3,64], index: 3, kind: output, shape index: {}]  }
   0x1 LB: > { %s1314_s13 = sadd.s32 4294967295, %s1686_s12   ;;  %p1318_p0 = scmp.ge.s32.totalorder %s1686_s12, 1  ;;  %s1686_s12 = sphi %s1714_s12, %s13_s12  }
   0x2   : > { %p137_p1 = scmp.lt.s32.totalorder %s1686_s12, 3 }
   0x4   : > { %p138_p2 = pnand %p1318_p0, %p137_p1 }
   0x5   : > { %p161_p3 = scmp.lt.s32.totalorder (!%p138_p2), %s1314_s13, 1  ;;  %s1737_s24 = smov (!%p138_p2), 0  }
   0x6   : > { %141 = sbr.rel (%p138_p2) target bundleno = 282 (0x11a), region = 32 }
   0xb   : > { %v1725_v0 = vld [vmem:[%s1937_s2] ss:$0 sm:$0xff]  ;;  %s1940_s13 = smov (!%p161_p3, %s1314_s13), 1 }
   0xc   : > { %s1620_s16 = smul.u32 24, %s1940_s13 }
   0xd   : > { %s1621_s17 = smul.u32 6, %s1940_s13 }
   0xe   : > { %s1730_s20 = scalar_lea.vmem %s1935_s0, %s1620_s16 }
   0xf   : > { %s1735_s23 = scalar_lea.vmem %s1938_s3, %s1621_s17 }
  0x10 LB: >> { %v1640_v1 = vld [vmem:[%s1936_s1 + $0x8] sm:$0xff]   ;;  %v1692_v2 = vmov 0.0   ;;  %v1641_v3 = vld [vmem:[%s1936_s1 + $0x18] sm:$0xff]   ;;  %v1642_v4 = vld [vmem:[%s1936_s1] sm:$0xff]   ;;  %vm1693_vm0 = vmmov 0   ;;  %s1322_s4 = sshll.u32 %s1690_s24, 2  ;;  %s1690_s24 = sphi %s1737_s24, %s184_s24  }
  0x11   : >> { %1492 = vmatprep.subr.bf16.mxu0 %v1692_v2  ;;  %1500 = vmatprep.subr.bf16.mxu1 %v1692_v2  ;;  %v1643_v5 = vld [vmem:[%s1936_s1 + $0x10] sm:$0xff]   ;;  %s1761_s7 = scalar_lea.vmem %s1730_s20, %s1322_s4  ;;  %vm204_vm1 = vcmask 261120   ;;  %v1645_v8 = vld [vmem:[%s1936_s1 + $0x28] sm:$0xff]   ;;  %v1646_v12 = vld [vmem:[%s1936_s1 + $0x38] sm:$0xff]   ;;  %s1441_s21 = sshll.u32 %s1690_s24, 1  ;;  %vm1235_vm2 = vcmask 517120  }
  0x12   : >> { %1493 = vmatpush3.bf16.msra.mxu0 %v1640_v1  ;;  %1496 = vmatprep.mubr.msk.bf16.mxu0 %vm1693_vm0, %v1692_v2  ;;  %v187_v6 = vld [vmem:[%s1761_s7] sm:$0x7]  ;;  %v1648_v18 = vld [vmem:[%s1936_s1 + $0x30] sm:$0xff]   ;;  %v1349_v19 = vld [vmem:[%s1761_s7 + $0x4] sm:$0x7]  ;;  %s1234_s22 = scalar_lea.vmem %s1735_s23, %s1441_s21  ;;  %s184_s24 = sadd.s32 1, %s1690_s24  }
  0x13   : >> { %1501 = vmatpush3.bf16.msra.mxu1 %v1641_v3  ;;  %1494 = vmatprep.subr.bf16.mxu0 %v1692_v2  ;;  %v1330_v7 = vcombine.low %v187_v6, %v187_v6  ;;  %v1647_v13 = vld [vmem:[%s1936_s1 + $0x20] sm:$0xff]   ;;  %v1649_v20 = vld [vmem:[%s1936_s1 + $0x48] sm:$0xff]   ;;  %v1361_v21 = vcombine.low %v1349_v19, %v1349_v19  ;;  %v1650_v24 = vld [vmem:[%s1936_s1 + $0x58] sm:$0xff]   ;;  %vm1236_vm3 = vsmask.f32 1280  ;;  %p181_p4 = scmp.ge.s32.totalorder %s184_s24, 3  }
  0x14   : >> { %1502 = vmatprep.subr.bf16.mxu1 %v1692_v2  ;;  %1504 = vmatprep.mubr.msk.bf16.mxu1 %vm1693_vm0, %v1692_v2  ;;  %v1651_v25 = vld [vmem:[%s1936_s1 + $0x40] sm:$0xff]   ;;  %v1652_v26 = vld [vmem:[%s1936_s1 + $0x50] sm:$0xff]   ;;  %v1654_v29 = vld [vmem:[%s1936_s1 + $0x68] sm:$0xff]  }
  0x15   : >> { %v258_v9 = vshrl.u32 %v1330_v7, 16  ;;  %v260_v10 = vshll.u32 %v1330_v7, 16  ;;  %v325_v14 = vrot.slane %v1330_v7, 1  ;;  %v522_v23 = vshll.u32 %v1361_v21, 16  ;;  %v1655_v31 = vld [vmem:[%s1936_s1 + $0x78] sm:$0xff]   ;;  %v1656_v32 = vld [vmem:[%s1936_s1 + $0x60] sm:$0xff]   ;;  %vm1237_vm4 = vmand %vm1235_vm2, %vm1236_vm3 }
  0x16   : >> { %1495 = vmatpush3.bf16.msra.mxu0 %v1642_v4  ;;  %v520_v27 = vshrl.u32 %v1361_v21, 16  ;;  %v1380_v33 = vld [vmem:[%s1761_s7 + $0x8] sm:$0x7]  ;;  %v587_v34 = vrot.slane %v1361_v21, 1  ;;  %v1657_v35 = vld [vmem:[%s1936_s1 + $0x70] sm:$0xff]   ;;  %v1659_v42 = vld [vmem:[%s1936_s1 + $0x98] sm:$0xff]  }
  0x17   : >> { %1503 = vmatpush3.bf16.msra.mxu1 %v1643_v5  ;;  %1508 = vmatprep.subr.bf16.mxu0 %v1692_v2  ;;  %v262_v11 = vrot.slane %v260_v10, 1  ;;  %v387_v16 = vrot.slane %v258_v9, 1  ;;  %v388_v17 = vrot.slane %v260_v10, 2  ;;  %v524_v28 = vrot.slane %v522_v23, 1  ;;  %v1658_v39 = vld [vmem:[%s1936_s1 + $0x88] sm:$0xff]   ;;  %v1660_v43 = vld [vmem:[%s1936_s1 + $0x80] sm:$0xff]  }
  0x18   : >> { %1516 = vmatprep.subr.bf16.mxu1 %v1692_v2  ;;  %v649_v36 = vrot.slane %v520_v27, 1  ;;  %v650_v37 = vrot.slane %v522_v23, 2  ;;  %v1392_v38 = vcombine.low %v1380_v33, %v1380_v33  ;;  %v1661_v46 = vld [vmem:[%s1936_s1 + $0x90] sm:$0xff]   ;;  %v1663_v47 = vld [vmem:[%s1936_s1 + $0xa8] sm:$0xff]   ;;  %v1664_v49 = vld [vmem:[%s1936_s1 + $0xb8] sm:$0xff]  }
  0x19   : >> { %1497 = vmatmul.mubr.msk.bf16.vlgmr.msra.gmra.mxu0 %vm204_vm1, %v187_v6  ;;  %v263_v15 = vor.u32 %v262_v11, %v258_v9  ;;  %v389_v22 = vor.u32 %v388_v17, %v387_v16  ;;  %v525_v30 = vor.u32 %v524_v28, %v520_v27  ;;  %v1665_v50 = vld [vmem:[%s1936_s1 + $0xa0] sm:$0xff]   ;;  %v1411_v51 = vld [vmem:[%s1761_s7 + $0xc] sm:$0x7]  ;;  %v1666_v56 = vld [vmem:[%s1936_s1 + $0xb0] sm:$0xff]  }
  0x1a   : >> { %1509 = vmatpush3.bf16.msra.mxu0 %v1645_v8  ;;  %1512 = vmatprep.mubr.msk.bf16.mxu0 %vm1693_vm0, %v1692_v2  ;;  %v651_v40 = vor.u32 %v650_v37, %v649_v36  ;;  %v784_v41 = vshll.u32 %v1392_v38, 16  ;;  %v782_v44 = vshrl.u32 %v1392_v38, 16  ;;  %v849_v52 = vrot.slane %v1392_v38, 1  ;;  %v1667_v57 = vld [vmem:[%s1936_s1 + $0xc8] sm:$0xff]   ;;  %v1668_v60 = vld [vmem:[%s1936_s1 + $0xd8] sm:$0xff]   ;;  %v1669_v61 = vld [vmem:[%s1936_s1 + $0xc0] sm:$0xff]  }
  0x1b   : >> { %1510 = vmatprep.subr.bf16.mxu0 %v1692_v2  ;;  %1505 = vmatmul.mubr.msk.bf16.vlgmr.msra.gmra.mxu1 %vm204_vm1, %v263_v15  ;;  %v1423_v55 = vcombine.low %v1411_v51, %v1411_v51  ;;  %v1670_v1 = vld [vmem:[%s1936_s1 + $0xd0] sm:$0xff]   ;;  %v1672_v3 = vld [vmem:[%s1936_s1 + $0xe8] sm:$0xff]   ;;  %v1673_v5 = vld [vmem:[%s1936_s1 + $0xf8] sm:$0xff]  }
  0x1c   : >> { %1517 = vmatpush3.bf16.msra.mxu1 %v1646_v12  ;;  %1520 = vmatprep.mubr.msk.bf16.mxu1 %vm1693_vm0, %v1692_v2  ;;  %v786_v45 = vrot.slane %v784_v41, 1  ;;  %v911_v53 = vrot.slane %v782_v44, 1  ;;  %v912_v54 = vrot.slane %v784_v41, 2  ;;  %v1674_v6 = vld [vmem:[%s1936_s1 + $0xe0] sm:$0xff]   ;;  %v1675_v10 = vld [vmem:[%s1936_s1 + $0xf0] sm:$0xff]  }
  0x1d   : >> { %1518 = vmatprep.subr.bf16.mxu1 %v1692_v2  ;;  %v1046_v59 = vshll.u32 %v1423_v55, 16  ;;  %v1044_v62 = vshrl.u32 %v1423_v55, 16  ;;  %v1111_v7 = vrot.slane %v1423_v55, 1 }
  0x1e   : >> { %1511 = vmatpush3.bf16.msra.mxu0 %v1647_v13  ;;  %v787_v48 = vor.u32 %v786_v45, %v782_v44  ;;  %v913_v58 = vor.u32 %v912_v54, %v911_v53 }
  0x1f   : >> { %1524 = vmatprep.subr.bf16.mxu0 %v1692_v2  ;;  %v1048_v63 = vrot.slane %v1046_v59, 1  ;;  %v1173_v8 = vrot.slane %v1044_v62, 1  ;;  %v1174_v9 = vrot.slane %v1046_v59, 2 }
  0x20   : >> { %1519 = vmatpush3.bf16.msra.mxu1 %v1648_v18 }
  0x21   : >> { %1513 = vmatmul.mubr.msk.bf16.vlgmr.msra.gmra.mxu0 %vm204_vm1, %v325_v14  ;;  %1532 = vmatprep.subr.bf16.mxu1 %v1692_v2  ;;  %v1049_v4 = vor.u32 %v1048_v63, %v1044_v62  ;;  %v1175_v11 = vor.u32 %v1174_v9, %v1173_v8 }
  0x22   : >> { %1525 = vmatpush3.bf16.msra.mxu0 %v1649_v20  ;;  %1528 = vmatprep.mubr.msk.bf16.mxu0 %vm1693_vm0, %v1692_v2 }
  0x23   : >> { %1526 = vmatprep.subr.bf16.mxu0 %v1692_v2  ;;  %1521 = vmatmul.mubr.msk.bf16.vlgmr.msra.gmra.mxu1 %vm204_vm1, %v389_v22 }
  0x24   : >> { %1533 = vmatpush3.bf16.msra.mxu1 %v1650_v24  ;;  %1536 = vmatprep.mubr.msk.bf16.mxu1 %vm1693_vm0, %v1692_v2 }
  0x25   : >> { %1534 = vmatprep.subr.bf16.mxu1 %v1692_v2 }
  0x26   : >> { %1527 = vmatpush3.bf16.msra.mxu0 %v1651_v25 }
  0x27   : >> { %1540 = vmatprep.subr.bf16.mxu0 %v1692_v2 }
  0x28   : >> { %1535 = vmatpush3.bf16.msra.mxu1 %v1652_v26 }
  0x29   : >> { %1529 = vmatmul.mubr.msk.bf16.vlgmr.msra.gmra.mxu0 %vm204_vm1, %v1349_v19  ;;  %1548 = vmatprep.subr.bf16.mxu1 %v1692_v2 }
  0x2a   : >> { %1541 = vmatpush3.bf16.msra.mxu0 %v1654_v29  ;;  %1544 = vmatprep.mubr.msk.bf16.mxu0 %vm1693_vm0, %v1692_v2 }
  0x2b   : >> { %1542 = vmatprep.subr.bf16.mxu0 %v1692_v2  ;;  %1537 = vmatmul.mubr.msk.bf16.vlgmr.msra.gmra.mxu1 %vm204_vm1, %v525_v30 }
  0x2c   : >> { %1549 = vmatpush3.bf16.msra.mxu1 %v1655_v31  ;;  %1552 = vmatprep.mubr.msk.bf16.mxu1 %vm1693_vm0, %v1692_v2 }
  0x2d   : >> { %1550 = vmatprep.subr.bf16.mxu1 %v1692_v2 }
  0x2e   : >> { %1543 = vmatpush3.bf16.msra.mxu0 %v1656_v32 }
  0x2f   : >> { %1556 = vmatprep.subr.bf16.mxu0 %v1692_v2 }
  0x30   : >> { %1551 = vmatpush3.bf16.msra.mxu1 %v1657_v35 }
  0x31   : >> { %1545 = vmatmul.mubr.msk.bf16.vlgmr.msra.gmra.mxu0 %vm204_vm1, %v587_v34  ;;  %1564 = vmatprep.subr.bf16.mxu1 %v1692_v2 }
  0x32   : >> { %1557 = vmatpush3.bf16.msra.mxu0 %v1658_v39  ;;  %1560 = vmatprep.mubr.msk.bf16.mxu0 %vm1693_vm0, %v1692_v2 }
  0x33   : >> { %1558 = vmatprep.subr.bf16.mxu0 %v1692_v2  ;;  %1553 = vmatmul.mubr.msk.bf16.vlgmr.msra.gmra.mxu1 %vm204_vm1, %v651_v40 }
  0x34   : >> { %1565 = vmatpush3.bf16.msra.mxu1 %v1659_v42  ;;  %1568 = vmatprep.mubr.msk.bf16.mxu1 %vm1693_vm0, %v1692_v2 }
  0x35   : >> { %1566 = vmatprep.subr.bf16.mxu1 %v1692_v2 }
  0x36   : >> { %1559 = vmatpush3.bf16.msra.mxu0 %v1660_v43 }
  0x37   : >> { %1572 = vmatprep.subr.bf16.mxu0 %v1692_v2 }
  0x38   : >> { %1567 = vmatpush3.bf16.msra.mxu1 %v1661_v46 }
  0x39   : >> { %1561 = vmatmul.mubr.msk.bf16.vlgmr.msra.gmra.mxu0 %vm204_vm1, %v1380_v33  ;;  %1580 = vmatprep.subr.bf16.mxu1 %v1692_v2 }
  0x3a   : >> { %1573 = vmatpush3.bf16.msra.mxu0 %v1663_v47  ;;  %1576 = vmatprep.mubr.msk.bf16.mxu0 %vm1693_vm0, %v1692_v2 }
  0x3b   : >> { %1574 = vmatprep.subr.bf16.mxu0 %v1692_v2  ;;  %1569 = vmatmul.mubr.msk.bf16.vlgmr.msra.gmra.mxu1 %vm204_vm1, %v787_v48 }
  0x3c   : >> { %1581 = vmatpush3.bf16.msra.mxu1 %v1664_v49  ;;  %1584 = vmatprep.mubr.msk.bf16.mxu1 %vm1693_vm0, %v1692_v2 }
  0x3d   : >> { %1582 = vmatprep.subr.bf16.mxu1 %v1692_v2 }
  0x3e   : >> { %1575 = vmatpush3.bf16.msra.mxu0 %v1665_v50 }
  0x3f   : >> { %1588 = vmatprep.subr.bf16.mxu0 %v1692_v2 }
  0x40   : >> { %1583 = vmatpush3.bf16.msra.mxu1 %v1666_v56 }
  0x41   : >> { %1577 = vmatmul.mubr.msk.bf16.vlgmr.msra.gmra.mxu0 %vm204_vm1, %v849_v52  ;;  %1596 = vmatprep.subr.bf16.mxu1 %v1692_v2 }
  0x42   : >> { %1589 = vmatpush3.bf16.msra.mxu0 %v1667_v57  ;;  %1592 = vmatprep.mubr.msk.bf16.mxu0 %vm1693_vm0, %v1692_v2 }
  0x43   : >> { %1590 = vmatprep.subr.bf16.mxu0 %v1692_v2  ;;  %1585 = vmatmul.mubr.msk.bf16.vlgmr.msra.gmra.mxu1 %vm204_vm1, %v913_v58 }
  0x44   : >> { %1597 = vmatpush3.bf16.msra.mxu1 %v1668_v60  ;;  %1600 = vmatprep.mubr.msk.bf16.mxu1 %vm1693_vm0, %v1692_v2 }
  0x45   : >> { %1598 = vmatprep.subr.bf16.mxu1 %v1692_v2 }
  0x46   : >> { %1591 = vmatpush3.bf16.msra.mxu0 %v1669_v61 }
  0x47   : >> { %1604 = vmatprep.subr.bf16.mxu0 %v1692_v2 }
  0x48   : >> { %1599 = vmatpush3.bf16.msra.mxu1 %v1670_v1 }
  0x49   : >> { %1593 = vmatmul.mubr.msk.bf16.vlgmr.msra.gmra.mxu0 %vm204_vm1, %v1411_v51  ;;  %1612 = vmatprep.subr.bf16.mxu1 %v1692_v2 }
  0x4a   : >> { %1605 = vmatpush3.bf16.msra.mxu0 %v1672_v3  ;;  %1608 = vmatprep.mubr.msk.bf16.mxu0 %vm1693_vm0, %v1692_v2 }
  0x4b   : >> { %1606 = vmatprep.subr.bf16.mxu0 %v1692_v2  ;;  %1601 = vmatmul.mubr.msk.bf16.vlgmr.msra.gmra.mxu1 %vm204_vm1, %v1049_v4 }
  0x4c   : >> { %1613 = vmatpush3.bf16.msra.mxu1 %v1673_v5  ;;  %1616 = vmatprep.mubr.msk.bf16.mxu1 %vm1693_vm0, %v1692_v2 }
  0x4d   : >> { %1614 = vmatprep.subr.bf16.mxu1 %v1692_v2 }
  0x4e   : >> { %1607 = vmatpush3.bf16.msra.mxu0 %v1674_v6 }
  0x50   : >> { %1615 = vmatpush3.bf16.msra.mxu1 %v1675_v10 }
  0x51   : >> { %1609 = vmatmul.mubr.msk.bf16.vlgmr.msra.gmra.mxu0 %vm204_vm1, %v1111_v7 }
  0x53   : >> { %1617 = vmatmul.mubr.msk.bf16.vlgmr.msra.gmra.mxu1 %vm204_vm1, %v1175_v11 }
  0xd9   : >> { %v242_v12 = vpop.f32.mrf.mxu0 }
  0xda   : >> { %v248_v39 = vadd.f32 %v1725_v0, %v242_v12 }
  0xdb   : >> { %v1498_v13 = vpop.f32.mrf.mxu0  ;;  %v313_v14 = vpop.f32.mrf.mxu1 }
  0xdc   : >> { %v319_v44 = vadd.f32 %v313_v14, %v248_v39 }
  0xdd   : >> { %v245_v15 = vpop.f32.mrf.mxu0  ;;  %v1506_v16 = vpop.f32.mrf.mxu1 }
  0xdf   : >> { %v1499_v17 = vpop.f32.mrf.mxu0  ;;  %v316_v18 = vpop.f32.mrf.mxu1 }
  0xe1   : >> { %v375_v19 = vpop.f32.mrf.mxu0  ;;  %v1507_v20 = vpop.f32.mrf.mxu1 }
  0xe2   : >> { %v381_v47 = vadd.f32 %v375_v19, %v319_v44 }
  0xe3   : >> { %v1514_v21 = vpop.f32.mrf.mxu0  ;;  %v439_v22 = vpop.f32.mrf.mxu1 }
  0xe4   : >> { %v445_v50 = vadd.f32 %v439_v22, %v381_v47 }
  0xe5   : >> { %v378_v23 = vpop.f32.mrf.mxu0  ;;  %v1522_v24 = vpop.f32.mrf.mxu1 }
  0xe7   : >> { %v1515_v2 = vpop.f32.mrf.mxu0  ;;  %v442_v25 = vpop.f32.mrf.mxu1 }
  0xe8   : >> { %v1238_v2 = vld [vmem:[%s1234_s22] sm:$0x3] }
  0xe9   : >> { %v504_v26 = vpop.f32.mrf.mxu0  ;;  %v1523_v27 = vpop.f32.mrf.mxu1 }
  0xea   : >> { %v510_v53 = vadd.f32 %v504_v26, %v445_v50 }
  0xeb   : >> { %v1530_v28 = vpop.f32.mrf.mxu0  ;;  %v575_v29 = vpop.f32.mrf.mxu1 }
  0xec   : >> { %v581_v56 = vadd.f32 %v575_v29, %v510_v53 }
  0xed   : >> { %v507_v30 = vpop.f32.mrf.mxu0  ;;  %v1538_v31 = vpop.f32.mrf.mxu1 }
  0xef   : >> { %v1531_v32 = vpop.f32.mrf.mxu0  ;;  %v578_v33 = vpop.f32.mrf.mxu1 }
  0xf1   : >> { %v637_v34 = vpop.f32.mrf.mxu0  ;;  %v1539_v35 = vpop.f32.mrf.mxu1 }
  0xf2   : >> { %v643_v59 = vadd.f32 %v637_v34, %v581_v56 }
  0xf3   : >> { %v1546_v36 = vpop.f32.mrf.mxu0  ;;  %v701_v37 = vpop.f32.mrf.mxu1 }
  0xf4   : >> { %v707_v62 = vadd.f32 %v701_v37, %v643_v59 }
  0xf5   : >> { %v640_v38 = vpop.f32.mrf.mxu0  ;;  %v1554_v40 = vpop.f32.mrf.mxu1 }
  0xf7   : >> { %v1547_v41 = vpop.f32.mrf.mxu0  ;;  %v704_v42 = vpop.f32.mrf.mxu1 }
  0xf9   : >> { %v766_v43 = vpop.f32.mrf.mxu0  ;;  %v1555_v45 = vpop.f32.mrf.mxu1 }
  0xfa   : >> { %v772_v3 = vadd.f32 %v766_v43, %v707_v62 }
  0xfb   : >> { %v1562_v46 = vpop.f32.mrf.mxu0  ;;  %v837_v48 = vpop.f32.mrf.mxu1 }
  0xfc   : >> { %v843_v6 = vadd.f32 %v837_v48, %v772_v3 }
  0xfd   : >> { %v769_v49 = vpop.f32.mrf.mxu0  ;;  %v1570_v51 = vpop.f32.mrf.mxu1 }
  0xff   : >> { %v1563_v52 = vpop.f32.mrf.mxu0  ;;  %v840_v54 = vpop.f32.mrf.mxu1 }
 0x101   : >> { %v899_v55 = vpop.f32.mrf.mxu0  ;;  %v1571_v57 = vpop.f32.mrf.mxu1 }
 0x102   : >> { %v905_v9 = vadd.f32 %v899_v55, %v843_v6 }
 0x103   : >> { %v1578_v58 = vpop.f32.mrf.mxu0  ;;  %v963_v60 = vpop.f32.mrf.mxu1 }
 0x104   : >> { %v969_v12 = vadd.f32 %v963_v60, %v905_v9 }
 0x105   : >> { %v902_v61 = vpop.f32.mrf.mxu0  ;;  %v1586_v63 = vpop.f32.mrf.mxu1 }
 0x107   : >> { %v1579_v1 = vpop.f32.mrf.mxu0  ;;  %v966_v4 = vpop.f32.mrf.mxu1 }
 0x109   : >> { %v1028_v5 = vpop.f32.mrf.mxu0  ;;  %v1587_v7 = vpop.f32.mrf.mxu1 }
 0x10a   : >> { %v1034_v15 = vadd.f32 %v1028_v5, %v969_v12 }
 0x10b   : >> { %v1594_v8 = vpop.f32.mrf.mxu0  ;;  %v1099_v10 = vpop.f32.mrf.mxu1 }
 0x10c   : >> { %v1105_v18 = vadd.f32 %v1099_v10, %v1034_v15 }
 0x10d   : >> { %v1031_v11 = vpop.f32.mrf.mxu0  ;;  %v1602_v13 = vpop.f32.mrf.mxu1 }
 0x10f   : >> { %v1595_v14 = vpop.f32.mrf.mxu0  ;;  %v1102_v16 = vpop.f32.mrf.mxu1 }
 0x111   : >> { %v1161_v17 = vpop.f32.mrf.mxu0  ;;  %v1603_v19 = vpop.f32.mrf.mxu1 }
 0x112   : >> { %v1167_v21 = vadd.f32 %v1161_v17, %v1105_v18 }
 0x113   : >> { %v1610_v20 = vpop.f32.mrf.mxu0  ;;  %v1225_v22 = vpop.f32.mrf.mxu1 }
 0x114   : >> { %v1231_v24 = vadd.f32 %v1225_v22, %v1167_v21 }
 0x115   : >> { %v1164_v23 = vpop.f32.mrf.mxu0  ;;  %v1618_v25 = vpop.f32.mrf.mxu1  ;;  %183 = sbr.rel (!%p181_p4) target bundleno = 16 (0x10), region = 89 }
 0x116   : >> { %v1232_v27 = vpack.c.bf16 %v1231_v24, %v1231_v24 }
 0x117   : >> { %v1611_v26 = vpop.f32.mrf.mxu0  ;;  %v1228_v28 = vpop.f32.mrf.mxu1 }
 0x118   : >> { %v1239_v29 = vsel %vm1237_vm4, %v1232_v27, %v1238_v2 }
 0x119   : >> { %1240 = vst [vmem:[%s1234_s22] sm:$0x3] %v1239_v29  ;;  %v1619_v30 = vpop.f32.mrf.mxu1 }
 0x11a PF: > { %s13_s12 = sadd.s32 1, %s1686_s12  }
 0x11b   : > { %p10_p5 = scmp.ge.s32.totalorder %s13_s12, 4  }
 0x11d   :  { %12 = sbr.rel (!%p10_p5) target bundleno = 1 (0x1), region = 100 }

// kernel: d_forward.9
= control target key start
LH: loop header
LB: loop body
LE: loop exit
PB: predicated region body
PF: predicated region fallthrough
CT: control target
= control target key end

     0   :  { %s2201_s14 = smov 0   ;;  %s2557_s0 = inlined_call_operand.vmem [shape: bf16[2,5,5,64], index: 0, kind: input, shape index: {}]   ;;  %s2558_s1 = inlined_call_operand.vmem [shape: bf16[16,64,1], index: 1, kind: input, shape index: {}]   ;;  %s2559_s2 = inlined_call_operand.<no memory space> [shape: f32[1,1], index: 2, kind: input, shape index: {}]   ;;  %s2560_s3 = inlined_call_operand.vmem [shape: f32[2,2,2,1], index: 3, kind: output, shape index: {}]  }
   0x1   :  { %v8_v0 = vstv %s2559_s2 }
   0x2   :  { %9 = vst [vmem:[#allocation2] sm:$0x1] %v8_v0 }
   0x3 LB: > { %s1573_s15 = sadd.s32 4294967295, %s2170_s14   ;;  %p1577_p0 = scmp.ge.s32.totalorder %s2170_s14, 1  ;;  %s2170_s14 = sphi %s2201_s14, %s15_s14  }
   0x4   : > { %p139_p1 = scmp.lt.s32.totalorder %s2170_s14, 3 }
   0x6   : > { %p140_p2 = pnand %p1577_p0, %p139_p1 }
   0x7   : > { %p163_p3 = scmp.lt.s32.totalorder (!%p140_p2), %s1573_s15, 1  ;;  %s2221_s23 = smov (!%p140_p2), 0  }
   0x8   : > { %143 = sbr.rel (%p140_p2) target bundleno = 378 (0x17a), region = 32 }
   0xd   : > { %v2209_v1 = vld [vmem:[#allocation2] ss:$0 sm:$0xff]  ;;  %s2562_s15 = smov (!%p163_p3, %s1573_s15), 1 }
   0xe   : > { %s2069_s2 = smul.u32 20, %s2562_s15  ;;  %s1796_s16 = sshll.u32 %s2562_s15, 2 }
   0xf   : > { %s2214_s19 = scalar_lea.vmem %s2560_s3, %s1796_s16 }
  0x10   : > { %s2219_s22 = scalar_lea.vmem %s2557_s0, %s2069_s2 }
  0x11 LB: >> { %v2088_v2 = vld [vmem:[%s2558_s1 + $0x18] sm:$0xff]   ;;  %v2176_v3 = vmov 0.0   ;;  %v2090_v5 = vld [vmem:[%s2558_s1 + $0x10] sm:$0xff]   ;;  %vm2177_vm0 = vmmov 0   ;;  %s1582_s30 = sshll.u32 %s2174_s23, 2  ;;  %v2092_v7 = vld [vmem:[%s2558_s1 + $0x8] sm:$0xff]   ;;  %s2174_s23 = sphi %s2221_s23, %s186_s23  }
  0x12   : >> { %1877 = vmatprep.subr.bf16.mxu0 %v2176_v3  ;;  %1889 = vmatprep.subr.bf16.mxu1 %v2176_v3  ;;  %v2089_v4 = vld [vmem:[%s2558_s1 + $0x38] sm:$0xff]   ;;  %v2091_v6 = vld [vmem:[%s2558_s1 + $0x30] sm:$0xff]   ;;  %s2248_s6 = scalar_lea.vmem %s2219_s22, %s1582_s30  ;;  %v2093_v8 = vld [vmem:[%s2558_s1 + $0x28] sm:$0xff]   ;;  %vm222_vm1 = vcmask 523264   ;;  %vm1498_vm2 = vcmask 1024  }
  0x13   : >> { %1878 = vmatpush3.bf16.msra.mxu0 %v2088_v2  ;;  %1885 = vmatprep.mubr.msk.bf16.mxu0 %vm2177_vm0, %v2176_v3  ;;  %v189_v9 = vld [vmem:[%s2248_s6] sm:$0x7]  ;;  %v2097_v16 = vld [vmem:[%s2558_s1 + $0x58] sm:$0xff]   ;;  %v2099_v19 = vld [vmem:[%s2558_s1 + $0x50] sm:$0xff]  }
  0x14   : >> { %1890 = vmatpush3.bf16.msra.mxu1 %v2089_v4  ;;  %1879 = vmatprep.subr.bf16.mxu0 %v2176_v3  ;;  %v1596_v10 = vcombine.low %v189_v9, %v189_v9  ;;  %v2094_v11 = vld [vmem:[%s2558_s1] sm:$0xff]   ;;  %v2098_v18 = vld [vmem:[%s2558_s1 + $0x78] sm:$0xff]   ;;  %v2100_v20 = vld [vmem:[%s2558_s1 + $0x70] sm:$0xff]  }
  0x15   : >> { %1891 = vmatprep.subr.bf16.mxu1 %v2176_v3  ;;  %1897 = vmatprep.mubr.msk.bf16.mxu1 %vm2177_vm0, %v2176_v3  ;;  %v2095_v12 = vld [vmem:[%s2558_s1 + $0x20] sm:$0xff]   ;;  %v2101_v21 = vld [vmem:[%s2558_s1 + $0x48] sm:$0xff]   ;;  %v2105_v29 = vld [vmem:[%s2558_s1 + $0x98] sm:$0xff]  }
  0x16   : >> { %v280_v13 = vshrl.u32 %v1596_v10, 16  ;;  %v282_v14 = vshll.u32 %v1596_v10, 16  ;;  %v2102_v22 = vld [vmem:[%s2558_s1 + $0x68] sm:$0xff]   ;;  %v2103_v25 = vld [vmem:[%s2558_s1 + $0x40] sm:$0xff]   ;;  %v363_v27 = vrot.slane %v1596_v10, 1  ;;  %v2106_v30 = vld [vmem:[%s2558_s1 + $0xb8] sm:$0xff]  }
  0x17   : >> { %1880 = vmatpush3.bf16.msra.mxu0 %v2090_v5  ;;  %v2104_v26 = vld [vmem:[%s2558_s1 + $0x60] sm:$0xff]   ;;  %v2107_v32 = vld [vmem:[%s2558_s1 + $0x90] sm:$0xff]   ;;  %v2109_v35 = vld [vmem:[%s2558_s1 + $0x88] sm:$0xff]  }
  0x18   : >> { %1892 = vmatpush3.bf16.msra.mxu1 %v2091_v6  ;;  %1881 = vmatprep.subr.bf16.mxu0 %v2176_v3  ;;  %v284_v15 = vrot.slane %v282_v14, 1  ;;  %v441_v23 = vrot.slane %v280_v13, 1  ;;  %v442_v24 = vrot.slane %v282_v14, 2  ;;  %v1629_v31 = vld [vmem:[%s2248_s6 + $0x4] sm:$0x7]  ;;  %v2108_v34 = vld [vmem:[%s2558_s1 + $0xb0] sm:$0xff]  }
  0x19   : >> { %1893 = vmatprep.subr.bf16.mxu1 %v2176_v3  ;;  %v2319_v33 = vcombine.low %v1629_v31, %v1629_v31  ;;  %v2110_v37 = vld [vmem:[%s2558_s1 + $0xa8] sm:$0xff]   ;;  %v2111_v38 = vld [vmem:[%s2558_s1 + $0x80] sm:$0xff]   ;;  %v2114_v43 = vld [vmem:[%s2558_s1 + $0xd8] sm:$0xff]  }
  0x1a   : >> { %v285_v17 = vor.u32 %v284_v15, %v280_v13  ;;  %v443_v28 = vor.u32 %v442_v24, %v441_v23  ;;  %v2112_v41 = vld [vmem:[%s2558_s1 + $0xa0] sm:$0xff]   ;;  %v2115_v44 = vld [vmem:[%s2558_s1 + $0xf8] sm:$0xff]   ;;  %v2116_v45 = vld [vmem:[%s2558_s1 + $0xd0] sm:$0xff]  }
  0x1b   : >> { %1882 = vmatpush3.bf16.msra.mxu0 %v2092_v7  ;;  %v608_v36 = vshll.u32 %v2319_v33, 16  ;;  %v606_v39 = vshrl.u32 %v2319_v33, 16  ;;  %v2117_v46 = vld [vmem:[%s2558_s1 + $0xf0] sm:$0xff]   ;;  %v2118_v47 = vld [vmem:[%s2558_s1 + $0xc8] sm:$0xff]   ;;  %v2120_v51 = vld [vmem:[%s2558_s1 + $0xc0] sm:$0xff]   ;;  %v689_v53 = vrot.slane %v2319_v33, 1 }
  0x1c   : >> { %1894 = vmatpush3.bf16.msra.mxu1 %v2093_v8  ;;  %1883 = vmatprep.subr.bf16.mxu0 %v2176_v3  ;;  %v2119_v48 = vld [vmem:[%s2558_s1 + $0xe8] sm:$0xff]   ;;  %v2121_v52 = vld [vmem:[%s2558_s1 + $0xe0] sm:$0xff]   ;;  %v2122_v55 = vld [vmem:[%s2558_s1 + $0x118] sm:$0xff]  }
  0x1d   : >> { %1895 = vmatprep.subr.bf16.mxu1 %v2176_v3  ;;  %v610_v40 = vrot.slane %v608_v36, 1  ;;  %v767_v49 = vrot.slane %v606_v39, 1  ;;  %v768_v50 = vrot.slane %v608_v36, 2  ;;  %v2123_v56 = vld [vmem:[%s2558_s1 + $0x138] sm:$0xff]   ;;  %v1684_v57 = vld [vmem:[%s2248_s6 + $0x8] sm:$0x7] }
  0x1e   : >> { %v2124_v58 = vld [vmem:[%s2558_s1 + $0x110] sm:$0xff]   ;;  %v2401_v59 = vcombine.low %v1684_v57, %v1684_v57  ;;  %v2126_v61 = vld [vmem:[%s2558_s1 + $0x108] sm:$0xff]   ;;  %v2128_v0 = vld [vmem:[%s2558_s1 + $0x100] sm:$0xff]  }
  0x1f   : >> { %1884 = vmatpush3.bf16.msra.mxu0 %v2094_v11  ;;  %v611_v42 = vor.u32 %v610_v40, %v606_v39  ;;  %v769_v54 = vor.u32 %v768_v50, %v767_v49  ;;  %v2125_v60 = vld [vmem:[%s2558_s1 + $0x130] sm:$0xff]   ;;  %v2127_v63 = vld [vmem:[%s2558_s1 + $0x128] sm:$0xff]   ;;  %v2129_v5 = vld [vmem:[%s2558_s1 + $0x120] sm:$0xff]  }
  0x20   : >> { %1896 = vmatpush3.bf16.msra.mxu1 %v2095_v12  ;;  %1901 = vmatprep.subr.bf16.mxu0 %v2176_v3  ;;  %v934_v62 = vshll.u32 %v2401_v59, 16  ;;  %v932_v2 = vshrl.u32 %v2401_v59, 16  ;;  %v2131_v7 = vld [vmem:[%s2558_s1 + $0x158] sm:$0xff]   ;;  %v2134_v10 = vld [vmem:[%s2558_s1 + $0x170] sm:$0xff]   ;;  %v2135_v11 = vld [vmem:[%s2558_s1 + $0x148] sm:$0xff]  }
  0x21   : >> { %1913 = vmatprep.subr.bf16.mxu1 %v2176_v3  ;;  %v2132_v8 = vld [vmem:[%s2558_s1 + $0x178] sm:$0xff]   ;;  %v2136_v12 = vld [vmem:[%s2558_s1 + $0x168] sm:$0xff]   ;;  %v2137_v15 = vld [vmem:[%s2558_s1 + $0x140] sm:$0xff]  }
  0x22   : >> { %1886 = vmatmul.mubr.msk.bf16.vlgmr.msra.gmra.mxu0 %vm222_vm1, %v189_v9  ;;  %v936_v4 = vrot.slane %v934_v62, 1  ;;  %v2133_v9 = vld [vmem:[%s2558_s1 + $0x150] sm:$0xff]   ;;  %v1093_v13 = vrot.slane %v932_v2, 1  ;;  %v1094_v14 = vrot.slane %v934_v62, 2  ;;  %v2148_v33 = vld [vmem:[%s2558_s1 + $0x1d8] sm:$0xff]  }
  0x23   : >> { %1898 = vmatmul.mubr.msk.bf16.vlgmr.msra.gmra.mxu1 %vm222_vm1, %v285_v17  ;;  %1902 = vmatpush3.bf16.msra.mxu0 %v2097_v16  ;;  %v2138_v16 = vld [vmem:[%s2558_s1 + $0x160] sm:$0xff]   ;;  %v1015_v17 = vrot.slane %v2401_v59, 1  ;;  %v2142_v24 = vld [vmem:[%s2558_s1 + $0x1b0] sm:$0xff]  }
  0x24   : >> { %1914 = vmatpush3.bf16.msra.mxu1 %v2098_v18  ;;  %1903 = vmatprep.subr.bf16.mxu0 %v2176_v3  ;;  %v937_v6 = vor.u32 %v936_v4, %v932_v2  ;;  %v1095_v18 = vor.u32 %v1094_v14, %v1093_v13  ;;  %v2151_v36 = vld [vmem:[%s2558_s1 + $0x1f0] sm:$0xff]  }
  0x25   : >> { %1915 = vmatprep.subr.bf16.mxu1 %v2176_v3  ;;  %1909 = vmatprep.mubr.msk.bf16.mxu0 %vm2177_vm0, %v2176_v3 }
  0x26   : >> { %1921 = vmatprep.mubr.msk.bf16.mxu1 %vm2177_vm0, %v2176_v3 }
  0x27   : >> { %1904 = vmatpush3.bf16.msra.mxu0 %v2099_v19  ;;  %v2139_v19 = vld [vmem:[%s2558_s1 + $0x198] sm:$0xff]  }
  0x28   : >> { %1916 = vmatpush3.bf16.msra.mxu1 %v2100_v20  ;;  %1905 = vmatprep.subr.bf16.mxu0 %v2176_v3  ;;  %v2140_v20 = vld [vmem:[%s2558_s1 + $0x1b8] sm:$0xff]  }
  0x29   : >> { %1917 = vmatprep.subr.bf16.mxu1 %v2176_v3 }
  0x2b   : >> { %1906 = vmatpush3.bf16.msra.mxu0 %v2101_v21  ;;  %v1739_v21 = vld [vmem:[%s2248_s6 + $0xc] sm:$0x7]  ;;  %s1793_s6 = sshll.u32 %s2174_s23, 1  ;;  %s186_s23 = sadd.s32 1, %s2174_s23  }
  0x2c   : >> { %1918 = vmatpush3.bf16.msra.mxu1 %v2102_v22  ;;  %1907 = vmatprep.subr.bf16.mxu0 %v2176_v3  ;;  %v2141_v22 = vld [vmem:[%s2558_s1 + $0x190] sm:$0xff]   ;;  %v1761_v23 = vcombine.low %v1739_v21, %v1739_v21  ;;  %s1497_s11 = scalar_lea.vmem %s2214_s19, %s1793_s6  ;;  %p183_p4 = scmp.ge.s32.totalorder %s186_s23, 2  }
  0x2d   : >> { %1919 = vmatprep.subr.bf16.mxu1 %v2176_v3 }
  0x2f   : >> { %1908 = vmatpush3.bf16.msra.mxu0 %v2103_v25  ;;  %v2143_v25 = vld [vmem:[%s2558_s1 + $0x188] sm:$0xff]  }
  0x30   : >> { %1920 = vmatpush3.bf16.msra.mxu1 %v2104_v26  ;;  %1925 = vmatprep.subr.bf16.mxu0 %v2176_v3  ;;  %v1260_v26 = vshll.u32 %v1761_v23, 16 }
  0x31   : >> { %1937 = vmatprep.subr.bf16.mxu1 %v2176_v3 }
  0x32   : >> { %1910 = vmatmul.mubr.msk.bf16.vlgmr.msra.gmra.mxu0 %vm222_vm1, %v363_v27  ;;  %v2144_v27 = vld [vmem:[%s2558_s1 + $0x1a8] sm:$0xff]   ;;  %v1420_v40 = vrot.slane %v1260_v26, 2 }
  0x33   : >> { %1922 = vmatmul.mubr.msk.bf16.vlgmr.msra.gmra.mxu1 %vm222_vm1, %v443_v28  ;;  %1926 = vmatpush3.bf16.msra.mxu0 %v2105_v29  ;;  %v2145_v28 = vld [vmem:[%s2558_s1 + $0x180] sm:$0xff]   ;;  %v1258_v29 = vshrl.u32 %v1761_v23, 16 }
  0x34   : >> { %1938 = vmatpush3.bf16.msra.mxu1 %v2106_v30  ;;  %1927 = vmatprep.subr.bf16.mxu0 %v2176_v3  ;;  %v1262_v30 = vrot.slane %v1260_v26, 1 }
  0x35   : >> { %1939 = vmatprep.subr.bf16.mxu1 %v2176_v3  ;;  %1933 = vmatprep.mubr.msk.bf16.mxu0 %vm2177_vm0, %v2176_v3  ;;  %v1419_v39 = vrot.slane %v1258_v29, 1 }
  0x36   : >> { %1945 = vmatprep.mubr.msk.bf16.mxu1 %vm2177_vm0, %v2176_v3 }
  0x37   : >> { %1928 = vmatpush3.bf16.msra.mxu0 %v2107_v32  ;;  %v1263_v32 = vor.u32 %v1262_v30, %v1258_v29 }
  0x38   : >> { %1940 = vmatpush3.bf16.msra.mxu1 %v2108_v34  ;;  %1929 = vmatprep.subr.bf16.mxu0 %v2176_v3  ;;  %v2149_v34 = vld [vmem:[%s2558_s1 + $0x1f8] sm:$0xff]  }
  0x39   : >> { %1941 = vmatprep.subr.bf16.mxu1 %v2176_v3 }
  0x3b   : >> { %1930 = vmatpush3.bf16.msra.mxu0 %v2109_v35  ;;  %v2150_v35 = vld [vmem:[%s2558_s1 + $0x1d0] sm:$0xff]  }
  0x3c   : >> { %1942 = vmatpush3.bf16.msra.mxu1 %v2110_v37  ;;  %1931 = vmatprep.subr.bf16.mxu0 %v2176_v3  ;;  %v2152_v37 = vld [vmem:[%s2558_s1 + $0x1c8] sm:$0xff]  }
  0x3d   : >> { %1943 = vmatprep.subr.bf16.mxu1 %v2176_v3 }
  0x3f   : >> { %1932 = vmatpush3.bf16.msra.mxu0 %v2111_v38  ;;  %v2153_v38 = vld [vmem:[%s2558_s1 + $0x1e8] sm:$0xff]  }
  0x40   : >> { %1944 = vmatpush3.bf16.msra.mxu1 %v2112_v41  ;;  %1949 = vmatprep.subr.bf16.mxu0 %v2176_v3  ;;  %v2154_v41 = vld [vmem:[%s2558_s1 + $0x1c0] sm:$0xff]  }
  0x41   : >> { %1961 = vmatprep.subr.bf16.mxu1 %v2176_v3 }
  0x42   : >> { %1934 = vmatmul.mubr.msk.bf16.vlgmr.msra.gmra.mxu0 %vm222_vm1, %v1629_v31  ;;  %v2146_v31 = vld [vmem:[%s2558_s1 + $0x1a0] sm:$0xff]  }
  0x43   : >> { %1946 = vmatmul.mubr.msk.bf16.vlgmr.msra.gmra.mxu1 %vm222_vm1, %v611_v42  ;;  %1950 = vmatpush3.bf16.msra.mxu0 %v2114_v43  ;;  %v2155_v42 = vld [vmem:[%s2558_s1 + $0x1e0] sm:$0xff]   ;;  %v1341_v43 = vrot.slane %v1761_v23, 1 }
  0x44   : >> { %1962 = vmatpush3.bf16.msra.mxu1 %v2115_v44  ;;  %1951 = vmatprep.subr.bf16.mxu0 %v2176_v3  ;;  %v1421_v44 = vor.u32 %v1420_v40, %v1419_v39 }
  0x45   : >> { %1963 = vmatprep.subr.bf16.mxu1 %v2176_v3  ;;  %1957 = vmatprep.mubr.msk.bf16.mxu0 %vm2177_vm0, %v2176_v3 }
  0x46   : >> { %1969 = vmatprep.mubr.msk.bf16.mxu1 %vm2177_vm0, %v2176_v3 }
  0x47   : >> { %1952 = vmatpush3.bf16.msra.mxu0 %v2116_v45 }
  0x48   : >> { %1964 = vmatpush3.bf16.msra.mxu1 %v2117_v46  ;;  %1953 = vmatprep.subr.bf16.mxu0 %v2176_v3 }
  0x49   : >> { %1965 = vmatprep.subr.bf16.mxu1 %v2176_v3 }
  0x4b   : >> { %1954 = vmatpush3.bf16.msra.mxu0 %v2118_v47 }
  0x4c   : >> { %1966 = vmatpush3.bf16.msra.mxu1 %v2119_v48  ;;  %1955 = vmatprep.subr.bf16.mxu0 %v2176_v3 }
  0x4d   : >> { %1967 = vmatprep.subr.bf16.mxu1 %v2176_v3 }
  0x4f   : >> { %1956 = vmatpush3.bf16.msra.mxu0 %v2120_v51 }
  0x50   : >> { %1968 = vmatpush3.bf16.msra.mxu1 %v2121_v52  ;;  %1973 = vmatprep.subr.bf16.mxu0 %v2176_v3 }
  0x51   : >> { %1985 = vmatprep.subr.bf16.mxu1 %v2176_v3 }
  0x52   : >> { %1958 = vmatmul.mubr.msk.bf16.vlgmr.msra.gmra.mxu0 %vm222_vm1, %v689_v53 }
  0x53   : >> { %1970 = vmatmul.mubr.msk.bf16.vlgmr.msra.gmra.mxu1 %vm222_vm1, %v769_v54  ;;  %1974 = vmatpush3.bf16.msra.mxu0 %v2122_v55 }
  0x54   : >> { %1986 = vmatpush3.bf16.msra.mxu1 %v2123_v56  ;;  %1975 = vmatprep.subr.bf16.mxu0 %v2176_v3 }
  0x55   : >> { %1987 = vmatprep.subr.bf16.mxu1 %v2176_v3  ;;  %1981 = vmatprep.mubr.msk.bf16.mxu0 %vm2177_vm0, %v2176_v3 }
  0x56   : >> { %1993 = vmatprep.mubr.msk.bf16.mxu1 %vm2177_vm0, %v2176_v3 }
  0x57   : >> { %1976 = vmatpush3.bf16.msra.mxu0 %v2124_v58 }
  0x58   : >> { %1988 = vmatpush3.bf16.msra.mxu1 %v2125_v60  ;;  %1977 = vmatprep.subr.bf16.mxu0 %v2176_v3 }
  0x59   : >> { %1989 = vmatprep.subr.bf16.mxu1 %v2176_v3 }
  0x5b   : >> { %1978 = vmatpush3.bf16.msra.mxu0 %v2126_v61 }
  0x5c   : >> { %1990 = vmatpush3.bf16.msra.mxu1 %v2127_v63  ;;  %1979 = vmatprep.subr.bf16.mxu0 %v2176_v3 }
  0x5d   : >> { %1991 = vmatprep.subr.bf16.mxu1 %v2176_v3 }
  0x5f   : >> { %1980 = vmatpush3.bf16.msra.mxu0 %v2128_v0 }
  0x60   : >> { %1992 = vmatpush3.bf16.msra.mxu1 %v2129_v5  ;;  %1997 = vmatprep.subr.bf16.mxu0 %v2176_v3 }
  0x61   : >> { %2009 = vmatprep.subr.bf16.mxu1 %v2176_v3 }
  0x62   : >> { %1982 = vmatmul.mubr.msk.bf16.vlgmr.msra.gmra.mxu0 %vm222_vm1, %v1684_v57 }
  0x63   : >> { %1994 = vmatmul.mubr.msk.bf16.vlgmr.msra.gmra.mxu1 %vm222_vm1, %v937_v6  ;;  %1998 = vmatpush3.bf16.msra.mxu0 %v2131_v7 }
  0x64   : >> { %2010 = vmatpush3.bf16.msra.mxu1 %v2132_v8  ;;  %1999 = vmatprep.subr.bf16.mxu0 %v2176_v3 }
  0x65   : >> { %2011 = vmatprep.subr.bf16.mxu1 %v2176_v3  ;;  %2005 = vmatprep.mubr.msk.bf16.mxu0 %vm2177_vm0, %v2176_v3 }
  0x66   : >> { %2017 = vmatprep.mubr.msk.bf16.mxu1 %vm2177_vm0, %v2176_v3 }
  0x67   : >> { %2000 = vmatpush3.bf16.msra.mxu0 %v2133_v9 }
  0x68   : >> { %2012 = vmatpush3.bf16.msra.mxu1 %v2134_v10  ;;  %2001 = vmatprep.subr.bf16.mxu0 %v2176_v3 }
  0x69   : >> { %2013 = vmatprep.subr.bf16.mxu1 %v2176_v3 }
  0x6b   : >> { %2002 = vmatpush3.bf16.msra.mxu0 %v2135_v11 }
  0x6c   : >> { %2014 = vmatpush3.bf16.msra.mxu1 %v2136_v12  ;;  %2003 = vmatprep.subr.bf16.mxu0 %v2176_v3 }
  0x6d   : >> { %2015 = vmatprep.subr.bf16.mxu1 %v2176_v3 }
  0x6f   : >> { %2004 = vmatpush3.bf16.msra.mxu0 %v2137_v15 }
  0x70   : >> { %2016 = vmatpush3.bf16.msra.mxu1 %v2138_v16  ;;  %2021 = vmatprep.subr.bf16.mxu0 %v2176_v3 }
  0x71   : >> { %2033 = vmatprep.subr.bf16.mxu1 %v2176_v3 }
  0x72   : >> { %2006 = vmatmul.mubr.msk.bf16.vlgmr.msra.gmra.mxu0 %vm222_vm1, %v1015_v17 }
  0x73   : >> { %2018 = vmatmul.mubr.msk.bf16.vlgmr.msra.gmra.mxu1 %vm222_vm1, %v1095_v18  ;;  %2022 = vmatpush3.bf16.msra.mxu0 %v2139_v19 }
  0x74   : >> { %2034 = vmatpush3.bf16.msra.mxu1 %v2140_v20  ;;  %2023 = vmatprep.subr.bf16.mxu0 %v2176_v3 }
  0x75   : >> { %2035 = vmatprep.subr.bf16.mxu1 %v2176_v3  ;;  %2029 = vmatprep.mubr.msk.bf16.mxu0 %vm2177_vm0, %v2176_v3 }
  0x76   : >> { %2041 = vmatprep.mubr.msk.bf16.mxu1 %vm2177_vm0, %v2176_v3 }
  0x77   : >> { %2024 = vmatpush3.bf16.msra.mxu0 %v2141_v22 }
  0x78   : >> { %2036 = vmatpush3.bf16.msra.mxu1 %v2142_v24  ;;  %2025 = vmatprep.subr.bf16.mxu0 %v2176_v3 }
  0x79   : >> { %2037 = vmatprep.subr.bf16.mxu1 %v2176_v3 }
  0x7b   : >> { %2026 = vmatpush3.bf16.msra.mxu0 %v2143_v25 }
  0x7c   : >> { %2038 = vmatpush3.bf16.msra.mxu1 %v2144_v27  ;;  %2027 = vmatprep.subr.bf16.mxu0 %v2176_v3 }
  0x7d   : >> { %2039 = vmatprep.subr.bf16.mxu1 %v2176_v3 }
  0x7f   : >> { %2028 = vmatpush3.bf16.msra.mxu0 %v2145_v28 }
  0x80   : >> { %2040 = vmatpush3.bf16.msra.mxu1 %v2146_v31  ;;  %2045 = vmatprep.subr.bf16.mxu0 %v2176_v3 }
  0x81   : >> { %2057 = vmatprep.subr.bf16.mxu1 %v2176_v3 }
  0x82   : >> { %2030 = vmatmul.mubr.msk.bf16.vlgmr.msra.gmra.mxu0 %vm222_vm1, %v1739_v21 }
  0x83   : >> { %2042 = vmatmul.mubr.msk.bf16.vlgmr.msra.gmra.mxu1 %vm222_vm1, %v1263_v32  ;;  %2046 = vmatpush3.bf16.msra.mxu0 %v2148_v33 }
  0x84   : >> { %2058 = vmatpush3.bf16.msra.mxu1 %v2149_v34  ;;  %2047 = vmatprep.subr.bf16.mxu0 %v2176_v3 }
  0x85   : >> { %2059 = vmatprep.subr.bf16.mxu1 %v2176_v3  ;;  %2053 = vmatprep.mubr.msk.bf16.mxu0 %vm2177_vm0, %v2176_v3 }
  0x86   : >> { %2065 = vmatprep.mubr.msk.bf16.mxu1 %vm2177_vm0, %v2176_v3 }
  0x87   : >> { %2048 = vmatpush3.bf16.msra.mxu0 %v2150_v35 }
  0x88   : >> { %2060 = vmatpush3.bf16.msra.mxu1 %v2151_v36  ;;  %2049 = vmatprep.subr.bf16.mxu0 %v2176_v3 }
  0x89   : >> { %2061 = vmatprep.subr.bf16.mxu1 %v2176_v3 }
  0x8b   : >> { %2050 = vmatpush3.bf16.msra.mxu0 %v2152_v37 }
  0x8c   : >> { %2062 = vmatpush3.bf16.msra.mxu1 %v2153_v38  ;;  %2051 = vmatprep.subr.bf16.mxu0 %v2176_v3 }
  0x8d   : >> { %2063 = vmatprep.subr.bf16.mxu1 %v2176_v3 }
  0x8f   : >> { %2052 = vmatpush3.bf16.msra.mxu0 %v2154_v41 }
  0x90   : >> { %2064 = vmatpush3.bf16.msra.mxu1 %v2155_v42 }
  0x92   : >> { %2054 = vmatmul.mubr.msk.bf16.vlgmr.msra.gmra.mxu0 %vm222_vm1, %v1341_v43 }
  0x93   : >> { %2066 = vmatmul.mubr.msk.bf16.vlgmr.msra.gmra.mxu1 %vm222_vm1, %v1421_v44 }
  0xe2   : >> { %v260_v45 = vpop.f32.mrf.mxu0 }
  0xe3   : >> { %v266_v46 = vadd.f32 %v2209_v1, %v260_v45  ;;  %v347_v47 = vpop.f32.mrf.mxu1 }
  0xe4   : >> { %v1887_v48 = vpop.f32.mrf.mxu0 }
  0xe5   : >> { %v353_v49 = vadd.f32 %v347_v47, %v266_v46  ;;  %v1899_v50 = vpop.f32.mrf.mxu1 }
  0xe6   : >> { %v263_v51 = vpop.f32.mrf.mxu0 }
  0xe7   : >> { %v350_v52 = vpop.f32.mrf.mxu1 }
  0xe8   : >> { %v1888_v53 = vpop.f32.mrf.mxu0 }
  0xe9   : >> { %v1900_v54 = vpop.f32.mrf.mxu1 }
  0xf2   : >> { %v425_v3 = vpop.f32.mrf.mxu0 }
  0xf3   : >> { %v431_v55 = vadd.f32 %v425_v3, %v353_v49  ;;  %v505_v56 = vpop.f32.mrf.mxu1 }
  0xf4   : >> { %v1911_v57 = vpop.f32.mrf.mxu0 }
  0xf5   : >> { %v511_v58 = vadd.f32 %v505_v56, %v431_v55  ;;  %v1923_v59 = vpop.f32.mrf.mxu1 }
  0xf6   : >> { %v428_v60 = vpop.f32.mrf.mxu0 }
  0xf7   : >> { %v508_v61 = vpop.f32.mrf.mxu1 }
  0xf8   : >> { %v1912_v62 = vpop.f32.mrf.mxu0 }
  0xf9   : >> { %v1924_v63 = vpop.f32.mrf.mxu1 }
 0x102   : >> { %v586_v0 = vpop.f32.mrf.mxu0 }
 0x103   : >> { %v673_v2 = vpop.f32.mrf.mxu1  ;;  %v592_v29 = vadd.f32 %v586_v0, %v511_v58 }
 0x104   : >> { %v1935_v4 = vpop.f32.mrf.mxu0 }
 0x105   : >> { %v1947_v5 = vpop.f32.mrf.mxu1  ;;  %v679_v34 = vadd.f32 %v673_v2, %v592_v29 }
 0x106   : >> { %v589_v6 = vpop.f32.mrf.mxu0 }
 0x107   : >> { %v676_v7 = vpop.f32.mrf.mxu1 }
 0x108   : >> { %v1936_v8 = vpop.f32.mrf.mxu0 }
 0x109   : >> { %v1948_v9 = vpop.f32.mrf.mxu1 }
 0x112   : >> { %v751_v10 = vpop.f32.mrf.mxu0 }
 0x113   : >> { %v831_v11 = vpop.f32.mrf.mxu1  ;;  %v757_v36 = vadd.f32 %v751_v10, %v679_v34 }
 0x114   : >> { %v1959_v12 = vpop.f32.mrf.mxu0 }
 0x115   : >> { %v1971_v13 = vpop.f32.mrf.mxu1  ;;  %v837_v37 = vadd.f32 %v831_v11, %v757_v36 }
 0x116   : >> { %v754_v14 = vpop.f32.mrf.mxu0 }
 0x117   : >> { %v834_v15 = vpop.f32.mrf.mxu1 }
 0x118   : >> { %v1960_v16 = vpop.f32.mrf.mxu0 }
 0x119   : >> { %v1972_v17 = vpop.f32.mrf.mxu1 }
 0x122   : >> { %v912_v18 = vpop.f32.mrf.mxu0 }
 0x123   : >> { %v999_v19 = vpop.f32.mrf.mxu1  ;;  %v918_v38 = vadd.f32 %v912_v18, %v837_v37 }
 0x124   : >> { %v1983_v20 = vpop.f32.mrf.mxu0 }
 0x125   : >> { %v1995_v21 = vpop.f32.mrf.mxu1  ;;  %v1005_v42 = vadd.f32 %v999_v19, %v918_v38 }
 0x126   : >> { %v915_v22 = vpop.f32.mrf.mxu0 }
 0x127   : >> { %v1002_v23 = vpop.f32.mrf.mxu1 }
 0x128   : >> { %v1984_v24 = vpop.f32.mrf.mxu0 }
 0x129   : >> { %v1996_v25 = vpop.f32.mrf.mxu1 }
 0x132   : >> { %v1077_v26 = vpop.f32.mrf.mxu0 }
 0x133   : >> { %v1157_v27 = vpop.f32.mrf.mxu1  ;;  %v1083_v45 = vadd.f32 %v1077_v26, %v1005_v42 }
 0x134   : >> { %v2007_v28 = vpop.f32.mrf.mxu0 }
 0x135   : >> { %v2019_v30 = vpop.f32.mrf.mxu1  ;;  %v1163_v49 = vadd.f32 %v1157_v27, %v1083_v45 }
 0x136   : >> { %v1080_v31 = vpop.f32.mrf.mxu0 }
 0x137   : >> { %v1160_v32 = vpop.f32.mrf.mxu1 }
 0x138   : >> { %v2008_v33 = vpop.f32.mrf.mxu0 }
 0x139   : >> { %v2020_v35 = vpop.f32.mrf.mxu1 }
 0x142   : >> { %v1238_v39 = vpop.f32.mrf.mxu0 }
 0x143   : >> { %v1325_v40 = vpop.f32.mrf.mxu1  ;;  %v1244_v50 = vadd.f32 %v1238_v39, %v1163_v49 }
 0x144   : >> { %v2031_v41 = vpop.f32.mrf.mxu0 }
 0x145   : >> { %v2043_v43 = vpop.f32.mrf.mxu1  ;;  %v1331_v51 = vadd.f32 %v1325_v40, %v1244_v50 }
 0x146   : >> { %v1241_v44 = vpop.f32.mrf.mxu0 }
 0x147   : >> { %v1328_v46 = vpop.f32.mrf.mxu1 }
 0x148   : >> { %v2032_v47 = vpop.f32.mrf.mxu0 }
 0x149   : >> { %v2044_v48 = vpop.f32.mrf.mxu1 }
 0x152   : >> { %v1403_v52 = vpop.f32.mrf.mxu0 }
 0x153   : >> { %v1409_v53 = vadd.f32 %v1403_v52, %v1331_v51  ;;  %v1483_v54 = vpop.f32.mrf.mxu1 }
 0x154   : >> { %v2055_v3 = vpop.f32.mrf.mxu0 }
 0x155   : >> { %v1489_v55 = vadd.f32 %v1483_v54, %v1409_v53  ;;  %v2067_v56 = vpop.f32.mrf.mxu1 }
 0x156   : >> { %v1406_v57 = vpop.f32.mrf.mxu0 }
 0x157   : >> { %v1490_v58 = vsub.f32 0.0, %v1489_v55  ;;  %v1486_v59 = vpop.f32.mrf.mxu1 }
 0x158   : >> { %v2056_v60 = vpop.f32.mrf.mxu0 }
 0x159   : >> { %v1491_v61 = vmul.f32 1.442695, %v1490_v58  ;;  %v2068_v62 = vpop.f32.mrf.mxu1 }
 0x15b   : >> { %2156 = vpow2.f32 %v1491_v61 }
 0x168   : >> { %v2157_v63 = vpop.eup %2156 }
 0x169   : >> { %v1493_v0 = vadd.f32 1.0, %v2157_v63 }
 0x16b   : >> { %2158 = vrcp.f32 %v1493_v0 }
 0x175   : > { %185 = sbr.rel (!%p183_p4) target bundleno = 17 (0x11), region = 89 }
 0x178   : >> { %v2159_v2 = vpop.eup %2158 }
 0x179   : >> { %1499 = vst.msk [vmem:[%s1497_s11] sm:$0x3] %vm1498_vm2, %v2159_v2 }
 0x17a PF: > { %s15_s14 = sadd.s32 1, %s2170_s14  }
 0x17b   : > { %p12_p5 = scmp.ge.s32.totalorder %s15_s14, 4  }
 0x17d   :  { %14 = sbr.rel (!%p12_p5) target bundleno = 3 (0x3), region = 100 }

</bundles_post_ra>
